<compile_context>
chip_gen: v7x
topology: tpu7x:2x2x1
jax: 0.10.0
libtpu: 0.0.40
codegen_flags: <defaults>
</compile_context>

<pallas_src>
import functools

import jax
import jax.numpy as jnp
import numpy as np
from jax.experimental import pallas as pl
from jax.experimental.pallas import tpu as pltpu

_DEFAULT_VMEM_LIMIT = 48 * 1024 * 1024
_vmem_limit_cache = None


def _vmem_limit_bytes():
    """~3/4 of physical VMEM: ~96 MiB on v5e/v6e (128 MiB), ~48 MiB on v7x (64 MiB)."""
    global _vmem_limit_cache
    if _vmem_limit_cache is None:
        limit = _DEFAULT_VMEM_LIMIT
        try:
            cap = getattr(pltpu.get_tpu_info(), "vmem_capacity_bytes", None)
            if cap and cap >= 32 * 1024 * 1024:
                limit = int(min(cap * 3 // 4, 100 * 1024 * 1024))
        except Exception:
            pass
        _vmem_limit_cache = limit
    return _vmem_limit_cache


def _cparams(sem):
    return pltpu.CompilerParams(dimension_semantics=sem,
                                vmem_limit_bytes=_vmem_limit_bytes())


def _pick_tile(dim, target):
    """Largest divisor of `dim` <= target, preferring multiples of 16 (bf16 sublane
    packing), then 8 (f32).  Falls back to the full dim (always a legal block)."""
    if dim <= target:
        return dim
    for mult in (16, 8):
        t = (min(target, dim) // mult) * mult
        while t >= mult:
            if dim % t == 0:
                return t
            t -= mult
    return dim


# ---------------------------------------------------------------------------
# Kernel 1: fused stem (im2col matmul) + expand 1x1, both + bias + SiLU.
# x is tiled (TM, K) over a 1-D grid; weights stay VMEM-resident, f32 accumulate.
# The 32-wide stem activation is only written (for the residual), never re-read.
# ---------------------------------------------------------------------------
def _stem_expand_kernel(p_ref, sw_ref, sb_ref, ew_ref, eb_ref, stem_ref, exp_ref):
    s = jnp.dot(p_ref[...], sw_ref[...], preferred_element_type=jnp.float32) + sb_ref[...]
    s = s * jax.nn.sigmoid(s)                        # SiLU
    s_bf = s.astype(jnp.bfloat16)
    stem_ref[...] = s_bf                             # kept only as MBConv residual
    e = jnp.dot(s_bf, ew_ref[...], preferred_element_type=jnp.float32) + eb_ref[...]
    e = e * jax.nn.sigmoid(e)
    exp_ref[...] = e.astype(exp_ref.dtype)


def stem_expand(patches, stem_w, stem_b, exp_w, exp_b, tm_target=8192):
    m, k = patches.shape
    stem_ch = stem_w.shape[1]
    exp_ch = exp_w.shape[1]
    tm = _pick_tile(m, tm_target)
    flops = 2 * m * k * stem_ch + 2 * m * stem_ch * exp_ch
    bytes_acc = 2 * m * (k + stem_ch + exp_ch) + 2 * (k * stem_ch + stem_ch * exp_ch)
    return pl.pallas_call(
        _stem_expand_kernel,
        out_shape=(jax.ShapeDtypeStruct((m, stem_ch), jnp.bfloat16),
                   jax.ShapeDtypeStruct((m, exp_ch), jnp.bfloat16)),
        grid=(m // tm,),
        in_specs=[
            pl.BlockSpec((tm, k), lambda i: (i, 0)),
            pl.BlockSpec((k, stem_ch), lambda i: (0, 0)),
            pl.BlockSpec((1, stem_ch), lambda i: (0, 0)),
            pl.BlockSpec((stem_ch, exp_ch), lambda i: (0, 0)),
            pl.BlockSpec((1, exp_ch), lambda i: (0, 0)),
        ],
        out_specs=(pl.BlockSpec((tm, stem_ch), lambda i: (i, 0)),
                   pl.BlockSpec((tm, exp_ch), lambda i: (i, 0))),
        compiler_params=_cparams(("parallel",)),
        cost_estimate=pl.CostEstimate(flops=flops,
                                      transcendentals=m * (stem_ch + exp_ch),
                                      bytes_accessed=bytes_acc),
    )(patches, stem_w, stem_b.reshape(1, stem_ch), exp_w, exp_b.reshape(1, exp_ch))


# ---------------------------------------------------------------------------
# Kernel 2: depthwise 3x3 conv (stride 1, pad 1 done outside) + bias + SiLU,
# with the squeeze-excite gate fused in (spatial mean in f32 -> se1+SiLU ->
# se2+sigmoid).  Gridded over batch; taps/weights loaded once per block.
# ---------------------------------------------------------------------------
def _dw_se_kernel(x_ref, w_ref, b_ref, w1_ref, b1_ref, w2_ref, b2_ref,
                  o_ref, g_ref, *, H, W):
    x = x_ref[0]                                     # (H+2, W+2, C) bf16 (no f32 copy)
    w = w_ref[...]                                   # (9, C) f32, single hoisted load
    b = b_ref[0]                                     # (C,)  f32
    C = x.shape[-1]
    acc = jnp.zeros((H, W, C), jnp.float32)
    # Per-tap slice + cast, f32 accumulation (no full-image f32 materialisation).
    # TODO(synk): halo row-tiling (grid over H) + pltpu.roll column shifts for
    #             feature maps whose padded image does not fit VMEM (v7x).
    for ky in range(3):
        for kx in range(3):
            tap = x[ky:ky + H, kx:kx + W, :].astype(jnp.float32)
            acc = acc + tap * w[ky * 3 + kx][None, None, :]
    y = acc + b[None, None, :]
    dw = y * jax.nn.sigmoid(y)                       # SiLU, f32
    o_ref[0] = dw.astype(o_ref.dtype)
    # Fused squeeze-excite gate from f32 activations.
    pooled = jnp.sum(dw, axis=(0, 1), keepdims=True)[0] * (1.0 / (H * W))   # (1, C)
    h = jnp.dot(pooled, w1_ref[...], preferred_element_type=jnp.float32) + b1_ref[...]
    h = h * jax.nn.sigmoid(h)
    g = jnp.dot(h, w2_ref[...], preferred_element_type=jnp.float32) + b2_ref[...]
    g_ref[0] = jax.nn.sigmoid(g)


def depthwise_se(x, dw_w, dw_b, se1_w, se1_b, se2_w, se2_b):
    # x: (N, H, W, C) bf16, dw_w: (3, 3, C), biases: (C,)
    N, H, W, C = x.shape
    se = se1_w.shape[1]
    xp = jnp.pad(x, ((0, 0), (1, 1), (1, 1), (0, 0)))
    return pl.pallas_call(
        functools.partial(_dw_se_kernel, H=H, W=W),
        out_shape=(jax.ShapeDtypeStruct((N, H, W, C), jnp.bfloat16),
                   jax.ShapeDtypeStruct((N, 1, C), jnp.float32)),
        grid=(N,),
        in_specs=[
            pl.BlockSpec((1, H + 2, W + 2, C), lambda n: (n, 0, 0, 0)),
            pl.BlockSpec((9, C), lambda n: (0, 0)),
            pl.BlockSpec((1, C), lambda n: (0, 0)),
            pl.BlockSpec((C, se), lambda n: (0, 0)),
            pl.BlockSpec((1, se), lambda n: (0, 0)),
            pl.BlockSpec((se, C), lambda n: (0, 0)),
            pl.BlockSpec((1, C), lambda n: (0, 0)),
        ],
        out_specs=(pl.BlockSpec((1, H, W, C), lambda n: (n, 0, 0, 0)),
                   pl.BlockSpec((1, 1, C), lambda n: (n, 0, 0))),
        compiler_params=_cparams(("parallel",)),
        cost_estimate=pl.CostEstimate(
            flops=N * (H * W * C * 18 + 4 * C * se),
            transcendentals=N * (H * W * C + se + C),
            bytes_accessed=2 * N * ((H + 2) * (W + 2) * C + H * W * C) + 4 * N * C),
    )(xp, dw_w.reshape(9, C), dw_b.reshape(1, C),
      se1_w, se1_b.reshape(1, se), se2_w, se2_b.reshape(1, C))


# ---------------------------------------------------------------------------
# Kernel 3: project 1x1 (fused SE gate + residual) + head 1x1 + SiLU +
# global-average-pool + fc, all in one kernel.  The 32-wide block activation
# stays in vregs (never hits HBM / no masked 32-lane stores); pooled sums
# accumulate in a VMEM scratch across the spatial grid axis; fc (lane-padded
# to 128) runs on the pooled row at the last step.
# ---------------------------------------------------------------------------
def _proj_head_fc_kernel(x_ref, g_ref, r_ref, pw_ref, pb_ref, hw_ref, hb_ref,
                         fw_ref, fb_ref, o_ref, acc_ref, *, inv_s):
    s = pl.program_id(1)

    @pl.when(s == 0)
    def _():
        acc_ref[...] = jnp.zeros_like(acc_ref)

    g = g_ref[0].astype(jnp.bfloat16)                       # (1, C)
    xg = x_ref[0] * g                                       # bf16 gate multiply, (TS, C)
    y = jnp.dot(xg, pw_ref[...], preferred_element_type=jnp.float32)
    y = y + pb_ref[...] + r_ref[0].astype(jnp.float32)      # MBConv output, vregs only
    h = jnp.dot(y.astype(jnp.bfloat16), hw_ref[...],
                preferred_element_type=jnp.float32) + hb_ref[...]
    h = h * jax.nn.sigmoid(h)                               # head SiLU, (TS, head_ch) f32
    acc_ref[...] += jnp.sum(h, axis=0, keepdims=True)

    @pl.when(s == pl.num_programs(1) - 1)
    def _():
        pooled = acc_ref[...] * inv_s                       # (1, head_ch)
        o = jnp.dot(pooled, fw_ref[...], preferred_element_type=jnp.float32) + fb_ref[...]
        o_ref[0] = o.astype(o_ref.dtype)


def project_head_pool_fc(dw3, gate, res3, proj_w, proj_b, head_w, head_b,
                         fc_w, fc_b, ts_target=2048):
    N, S, C = dw3.shape
    proj_out = proj_w.shape[1]
    head_ch = head_w.shape[1]
    d = fc_w.shape[1]
    ts = _pick_tile(S, ts_target)
    flops = 2 * N * S * (C * proj_out + proj_out * head_ch) + 2 * N * head_ch * d
    bytes_acc = 2 * N * S * (C + proj_out) + 4 * N * (C + d)
    return pl.pallas_call(
        functools.partial(_proj_head_fc_kernel, inv_s=1.0 / S),
        out_shape=jax.ShapeDtypeStruct((N, 1, d), jnp.float32),
        grid=(N, S // ts),
        in_specs=[
            pl.BlockSpec((1, ts, C), lambda n, s: (n, s, 0)),
            pl.BlockSpec((1, 1, C), lambda n, s: (n, 0, 0)),
            pl.BlockSpec((1, ts, proj_out), lambda n, s: (n, s, 0)),
            pl.BlockSpec((C, proj_out), lambda n, s: (0, 0)),
            pl.BlockSpec((1, proj_out), lambda n, s: (0, 0)),
            pl.BlockSpec((proj_out, head_ch), lambda n, s: (0, 0)),
            pl.BlockSpec((1, head_ch), lambda n, s: (0, 0)),
            pl.BlockSpec((head_ch, d), lambda n, s: (0, 0)),
            pl.BlockSpec((1, d), lambda n, s: (0, 0)),
        ],
        out_specs=pl.BlockSpec((1, 1, d), lambda n, s: (n, 0, 0)),
        scratch_shapes=[pltpu.VMEM((1, head_ch), jnp.float32)],
        compiler_params=_cparams(("parallel", "arbitrary")),
        cost_estimate=pl.CostEstimate(flops=flops,
                                      transcendentals=N * S * head_ch,
                                      bytes_accessed=bytes_acc),
    )(dw3, gate, res3, proj_w, proj_b.reshape(1, proj_out),
      head_w, head_b.reshape(1, head_ch), fc_w, fc_b.reshape(1, d))


# ---------------------------------------------------------------------------
# Parameter setup (deterministic synthetic init; BatchNorms folded into weights).
# ---------------------------------------------------------------------------
def init_params(key, in_ch=3, stem_ch=32, exp_ch=128, se_ch=8, head_ch=128, out_dim=10):
    ks = jax.random.split(key, 16)

    def w(k, shape, fan_in):
        return jax.random.normal(k, shape, jnp.float32) / jnp.sqrt(float(fan_in))

    def b(k, n):
        return 0.01 * jax.random.normal(k, (n,), jnp.float32)

    return {
        "stem_w": w(ks[0], (9 * in_ch, stem_ch), 9 * in_ch),
        "stem_b": b(ks[1], stem_ch),
        "exp_w": w(ks[2], (stem_ch, exp_ch), stem_ch),
        "exp_b": b(ks[3], exp_ch),
        "dw_w": w(ks[4], (3, 3, exp_ch), 9),
        "dw_b": b(ks[5], exp_ch),
        "se1_w": w(ks[6], (exp_ch, se_ch), exp_ch),
        "se1_b": b(ks[7], se_ch),
        "se2_w": w(ks[8], (se_ch, exp_ch), se_ch),
        "se2_b": b(ks[9], exp_ch),
        "proj_w": w(ks[10], (exp_ch, stem_ch), exp_ch),
        "proj_b": b(ks[11], stem_ch),
        "head_w": w(ks[12], (stem_ch, head_ch), stem_ch),
        "head_b": b(ks[13], head_ch),
        "fc_w": w(ks[14], (head_ch, out_dim), head_ch),
        "fc_b": b(ks[15], out_dim),
    }


def _im2col_3x3_s2(x):
    # x: (N, H, W, C) -> (N, H//2, W//2, 9*C), pad=1, stride=2 (glue: pure reshuffle)
    # NOTE: only exact for even H, W (odd inputs would drop the last output row/col).
    N, H, W, C = x.shape
    Ho, Wo = H // 2, W // 2
    xp = jnp.pad(x, ((0, 0), (1, 1), (1, 1), (0, 0)))
    cols = []
    for ky in range(3):
        for kx in range(3):
            cols.append(xp[:, ky:ky + 2 * Ho:2, kx:kx + 2 * Wo:2, :])
    return jnp.concatenate(cols, axis=-1)


# ---------------------------------------------------------------------------
# Forward pass (EffNetClassifier.forward): backbone(x) -> fc(x)
# ---------------------------------------------------------------------------
def effnet_forward(params, x_nchw):
    x = jnp.transpose(x_nchw, (0, 2, 3, 1)).astype(jnp.float32)  # NCHW -> NHWC
    N, H, W, C = x.shape
    assert H % 2 == 0 and W % 2 == 0, "stride-2 stem expects even spatial dims"
    Ho, Wo = H // 2, W // 2
    S = Ho * Wo
    stem_ch = params["stem_w"].shape[1]
    exp_ch = params["exp_w"].shape[1]
    out_dim = params["fc_w"].shape[1]

    # bf16 copies of the MXU weights; activations between kernels are bf16,
    # accumulation / biases / SE / pooling math stay f32.
    stem_w = params["stem_w"].astype(jnp.bfloat16)
    exp_w = params["exp_w"].astype(jnp.bfloat16)
    proj_w = params["proj_w"].astype(jnp.bfloat16)
    head_w = params["head_w"].astype(jnp.bfloat16)

    # --- stem im2col (glue; K padded 27 -> 32 for aligned loads).
    # TODO(synk): move the 3x3/s2 patch gather inside the stem kernel via a
    #             halo-row BlockSpec to avoid the 9x-expanded HBM intermediate.
    k_raw = 9 * C
    k_pad = ((k_raw + 7) // 8) * 8
    patches = _im2col_3x3_s2(x).reshape(N * S, k_raw)
    patches = jnp.pad(patches, ((0, 0), (0, k_pad - k_raw))).astype(jnp.bfloat16)
    stem_w_p = jnp.pad(stem_w, ((0, k_pad - k_raw), (0, 0)))

    # --- fused stem + expand (stem kept only for the residual)
    stem, exp = stem_expand(patches, stem_w_p, params["stem_b"], exp_w, params["exp_b"])

    # --- depthwise 3x3 + SiLU with fused squeeze-excite gate
    dw, gate = depthwise_se(exp.reshape(N, Ho, Wo, exp_ch),
                            params["dw_w"], params["dw_b"],
                            params["se1_w"], params["se1_b"],
                            params["se2_w"], params["se2_b"])

    # --- project(+gate,+residual) + head 1x1 + SiLU + global avg pool + fc, fused
    d_pad = max(128, ((out_dim + 127) // 128) * 128)
    fc_w_p = jnp.pad(params["fc_w"], ((0, 0), (0, d_pad - out_dim)))
    fc_b_p = jnp.pad(params["fc_b"], ((0, d_pad - out_dim),))
    logits = project_head_pool_fc(dw.reshape(N, S, exp_ch), gate,
                                  stem.reshape(N, S, stem_ch),
                                  proj_w, params["proj_b"],
                                  head_w, params["head_b"], fc_w_p, fc_b_p)
    return logits[:, 0, :out_dim]


# ---------------------------------------------------------------------------
# Pure-JAX f32 reference for correctness checking.
# ---------------------------------------------------------------------------
def effnet_forward_ref(params, x_nchw):
    silu = lambda v: v * jax.nn.sigmoid(v)
    x = jnp.transpose(x_nchw, (0, 2, 3, 1)).astype(jnp.float32)
    N, H, W, C = x.shape
    Ho, Wo = H // 2, W // 2
    exp_ch = params["exp_w"].shape[1]
    head_ch = params["head_w"].shape[1]

    patches = _im2col_3x3_s2(x).reshape(N * Ho * Wo, 9 * C)
    stem = silu(patches @ params["stem_w"] + params["stem_b"])
    exp = silu(stem @ params["exp_w"] + params["exp_b"]).reshape(N, Ho, Wo, exp_ch)
    xp = jnp.pad(exp, ((0, 0), (1, 1), (1, 1), (0, 0)))
    acc = jnp.zeros((N, Ho, Wo, exp_ch), jnp.float32)
    for ky in range(3):
        for kx in range(3):
            acc = acc + xp[:, ky:ky + Ho, kx:kx + Wo, :] * params["dw_w"][ky, kx]
    dw = silu(acc + params["dw_b"])
    pooled = dw.reshape(N, Ho * Wo, exp_ch).mean(axis=1)
    se_mid = silu(pooled @ params["se1_w"] + params["se1_b"])
    se_gate_ = jax.nn.sigmoid(se_mid @ params["se2_w"] + params["se2_b"])
    gated = (dw * se_gate_[:, None, None, :]).reshape(N * Ho * Wo, exp_ch)
    block = gated @ params["proj_w"] + params["proj_b"] + stem
    feats = silu(block @ params["head_w"] + params["head_b"])
    return feats.reshape(N, Ho * Wo, head_ch).mean(axis=1) @ params["fc_w"] + params["fc_b"]


if __name__ == "__main__":
    key = jax.random.PRNGKey(0)
    pkey, xkey = jax.random.split(key)
    out_dim = 10
    params = init_params(pkey, out_dim=out_dim)

    # PyTorch-style NCHW image input at small shape.
    x = jax.random.normal(xkey, (2, 3, 16, 16), jnp.float32)

    out = jax.jit(effnet_forward)(params, x)
    out = jax.block_until_ready(out)
    assert out.shape == (2, out_dim), out.shape

    ref = effnet_forward_ref(params, x)
    np.testing.assert_allclose(np.asarray(out), np.asarray(ref), rtol=5e-2, atol=5e-2)

    print("KERNEL_OK")
</pallas_src>

<mosaic_0001>
module attributes {stable_mosaic.version = 11 : i64} {
  func.func @_stem_expand_kernel(%arg0: i32, %arg1: memref<128x32xbf16, #tpu.memory_space<vmem>>, %arg2: memref<32x32xbf16, #tpu.memory_space<vmem>>, %arg3: memref<1x32xf32, #tpu.memory_space<vmem>>, %arg4: memref<32x128xbf16, #tpu.memory_space<vmem>>, %arg5: memref<1x128xf32, #tpu.memory_space<vmem>>, %arg6: memref<128x32xbf16, #tpu.memory_space<vmem>>, %arg7: memref<128x128xbf16, #tpu.memory_space<vmem>>) attributes {dimension_semantics = [#tpu.dimension_semantics<parallel>], iteration_bounds = array<i64: 1>, scalar_prefetch = 0 : i64, scratch_operands = 0 : i64, tpu.core_type = #tpu.core_type<tc>, window_params = [{transform_indices = @transform_0, window_bounds = array<i64: 128, 32>}, {pipeline_mode = #tpu.pipeline_mode<synchronous>, transform_indices = @transform_1, window_bounds = array<i64: 32, 32>}, {pipeline_mode = #tpu.pipeline_mode<synchronous>, transform_indices = @transform_2, window_bounds = array<i64: 1, 32>}, {pipeline_mode = #tpu.pipeline_mode<synchronous>, transform_indices = @transform_3, window_bounds = array<i64: 32, 128>}, {pipeline_mode = #tpu.pipeline_mode<synchronous>, transform_indices = @transform_4, window_bounds = array<i64: 1, 128>}, {transform_indices = @transform_5, window_bounds = array<i64: 128, 32>}, {transform_indices = @transform_6, window_bounds = array<i64: 128, 128>}]} {
    %c0 = arith.constant 0 : index
    %c0_0 = arith.constant 0 : index
    %0 = vector.load %arg1[%c0, %c0_0] : memref<128x32xbf16, #tpu.memory_space<vmem>>, vector<128x32xbf16>
    %c0_1 = arith.constant 0 : index
    %c0_2 = arith.constant 0 : index
    %1 = vector.load %arg2[%c0_1, %c0_2] : memref<32x32xbf16, #tpu.memory_space<vmem>>, vector<32x32xbf16>
    %cst = arith.constant dense<0.000000e+00> : vector<128x32xf32>
    %2 = tpu.matmul %0, %1, %cst {dimension_numbers = #tpu.dot_dimension_numbers<[1], [0], [0], [1], [0, 0, 1, 1], [], []>} : vector<128x32xbf16>, vector<32x32xbf16>, vector<128x32xf32> -> vector<128x32xf32>
    %c0_3 = arith.constant 0 : index
    %c0_4 = arith.constant 0 : index
    %3 = vector.load %arg3[%c0_3, %c0_4] : memref<1x32xf32, #tpu.memory_space<vmem>>, vector<1x32xf32>
    %4 = vector.broadcast %3 : vector<1x32xf32> to vector<128x32xf32>
    %5 = arith.addf %2, %4 : vector<128x32xf32>
    %6 = arith.negf %5 : vector<128x32xf32>
    %7 = math.exp %6 : vector<128x32xf32>
    %cst_5 = arith.constant 1.000000e+00 : f32
    %8 = vector.broadcast %cst_5 : f32 to vector<128x32xf32>
    %9 = arith.addf %8, %7 : vector<128x32xf32>
    %10 = arith.divf %8, %9 : vector<128x32xf32>
    %11 = arith.mulf %5, %10 : vector<128x32xf32>
    %12 = arith.truncf %11 : vector<128x32xf32> to vector<128x32xbf16>
    %c0_6 = arith.constant 0 : index
    %c0_7 = arith.constant 0 : index
    %13 = vector.load %arg6[%c0_6, %c0_7] : memref<128x32xbf16, #tpu.memory_space<vmem>>, vector<128x32xbf16>
    tpu.vector_store %arg6[%c0_6, %c0_7], %12 {strides = array<i32>} : memref<128x32xbf16, #tpu.memory_space<vmem>>, vector<128x32xbf16>,
    %c0_8 = arith.constant 0 : index
    %c0_9 = arith.constant 0 : index
    %14 = vector.load %arg4[%c0_8, %c0_9] : memref<32x128xbf16, #tpu.memory_space<vmem>>, vector<32x128xbf16>
    %cst_10 = arith.constant dense<0.000000e+00> : vector<128x128xf32>
    %15 = tpu.matmul %12, %14, %cst_10 {dimension_numbers = #tpu.dot_dimension_numbers<[1], [0], [0], [1], [0, 0, 1, 1], [], []>} : vector<128x32xbf16>, vector<32x128xbf16>, vector<128x128xf32> -> vector<128x128xf32>
    %c0_11 = arith.constant 0 : index
    %c0_12 = arith.constant 0 : index
    %16 = vector.load %arg5[%c0_11, %c0_12] : memref<1x128xf32, #tpu.memory_space<vmem>>, vector<1x128xf32>
    %17 = vector.broadcast %16 : vector<1x128xf32> to vector<128x128xf32>
    %18 = arith.addf %15, %17 : vector<128x128xf32>
    %19 = arith.negf %18 : vector<128x128xf32>
    %20 = math.exp %19 : vector<128x128xf32>
    %cst_13 = arith.constant 1.000000e+00 : f32
    %21 = vector.broadcast %cst_13 : f32 to vector<128x128xf32>
    %22 = arith.addf %21, %20 : vector<128x128xf32>
    %23 = arith.divf %21, %22 : vector<128x128xf32>
    %24 = arith.mulf %18, %23 : vector<128x128xf32>
    %25 = arith.truncf %24 : vector<128x128xf32> to vector<128x128xbf16>
    %c0_14 = arith.constant 0 : index
    %c0_15 = arith.constant 0 : index
    %26 = vector.load %arg7[%c0_14, %c0_15] : memref<128x128xbf16, #tpu.memory_space<vmem>>, vector<128x128xbf16>
    tpu.vector_store %arg7[%c0_14, %c0_15], %25 {strides = array<i32>} : memref<128x128xbf16, #tpu.memory_space<vmem>>, vector<128x128xbf16>,
    return
  }
  func.func @transform_0(%arg0: i32) -> (i32, i32) {
    %c0_i32 = arith.constant 0 : i32
    %c0_i32_0 = arith.constant 0 : i32
    return %arg0, %c0_i32 : i32, i32
  }
  func.func @transform_1(%arg0: i32) -> (i32, i32) {
    %c0_i32 = arith.constant 0 : i32
    %c0_i32_0 = arith.constant 0 : i32
    %c0_i32_1 = arith.constant 0 : i32
    return %c0_i32, %c0_i32_0 : i32, i32
  }
  func.func @transform_2(%arg0: i32) -> (i32, i32) {
    %c0_i32 = arith.constant 0 : i32
    %c0_i32_0 = arith.constant 0 : i32
    %c0_i32_1 = arith.constant 0 : i32
    return %c0_i32, %c0_i32_0 : i32, i32
  }
  func.func @transform_3(%arg0: i32) -> (i32, i32) {
    %c0_i32 = arith.constant 0 : i32
    %c0_i32_0 = arith.constant 0 : i32
    %c0_i32_1 = arith.constant 0 : i32
    return %c0_i32, %c0_i32_0 : i32, i32
  }
  func.func @transform_4(%arg0: i32) -> (i32, i32) {
    %c0_i32 = arith.constant 0 : i32
    %c0_i32_0 = arith.constant 0 : i32
    %c0_i32_1 = arith.constant 0 : i32
    return %c0_i32, %c0_i32_0 : i32, i32
  }
  func.func @transform_5(%arg0: i32) -> (i32, i32) {
    %c0_i32 = arith.constant 0 : i32
    %c0_i32_0 = arith.constant 0 : i32
    return %arg0, %c0_i32 : i32, i32
  }
  func.func @transform_6(%arg0: i32) -> (i32, i32) {
    %c0_i32 = arith.constant 0 : i32
    %c0_i32_0 = arith.constant 0 : i32
    return %arg0, %c0_i32 : i32, i32
  }
}

module attributes {stable_mosaic.version = 11 : i64} {
  func.func @_dw_se_kernel(%arg0: i32, %arg1: memref<1x10x10x128xbf16, #tpu.memory_space<vmem>>, %arg2: memref<9x128xf32, #tpu.memory_space<vmem>>, %arg3: memref<1x128xf32, #tpu.memory_space<vmem>>, %arg4: memref<128x8xf32, #tpu.memory_space<vmem>>, %arg5: memref<1x8xf32, #tpu.memory_space<vmem>>, %arg6: memref<8x128xf32, #tpu.memory_space<vmem>>, %arg7: memref<1x128xf32, #tpu.memory_space<vmem>>, %arg8: memref<1x8x8x128xbf16, #tpu.memory_space<vmem>>, %arg9: memref<1x1x128xf32, #tpu.memory_space<vmem>>) attributes {dimension_semantics = [#tpu.dimension_semantics<parallel>], iteration_bounds = array<i64: 2>, scalar_prefetch = 0 : i64, scratch_operands = 0 : i64, tpu.core_type = #tpu.core_type<tc>, window_params = [{transform_indices = @transform_0, window_bounds = array<i64: 1, 10, 10, 128>}, {pipeline_mode = #tpu.pipeline_mode<synchronous>, transform_indices = @transform_1, window_bounds = array<i64: 9, 128>}, {pipeline_mode = #tpu.pipeline_mode<synchronous>, transform_indices = @transform_2, window_bounds = array<i64: 1, 128>}, {pipeline_mode = #tpu.pipeline_mode<synchronous>, transform_indices = @transform_3, window_bounds = array<i64: 128, 8>}, {pipeline_mode = #tpu.pipeline_mode<synchronous>, transform_indices = @transform_4, window_bounds = array<i64: 1, 8>}, {pipeline_mode = #tpu.pipeline_mode<synchronous>, transform_indices = @transform_5, window_bounds = array<i64: 8, 128>}, {pipeline_mode = #tpu.pipeline_mode<synchronous>, transform_indices = @transform_6, window_bounds = array<i64: 1, 128>}, {transform_indices = @transform_7, window_bounds = array<i64: 1, 8, 8, 128>}, {transform_indices = @transform_8, window_bounds = array<i64: 1, 1, 128>}]} {
    %c0 = arith.constant 0 : index
    %c0_0 = arith.constant 0 : index
    %c0_1 = arith.constant 0 : index
    %c0_2 = arith.constant 0 : index
    %0 = vector.load %arg1[%c0, %c0_0, %c0_1, %c0_2] : memref<1x10x10x128xbf16, #tpu.memory_space<vmem>>, vector<1x10x10x128xbf16>
    %1 = vector.shape_cast %0 : vector<1x10x10x128xbf16> to vector<10x10x128xbf16>
    %c0_3 = arith.constant 0 : index
    %c0_4 = arith.constant 0 : index
    %2 = vector.load %arg2[%c0_3, %c0_4] : memref<9x128xf32, #tpu.memory_space<vmem>>, vector<9x128xf32>
    %c0_5 = arith.constant 0 : index
    %c0_6 = arith.constant 0 : index
    %3 = vector.load %arg3[%c0_5, %c0_6] : memref<1x128xf32, #tpu.memory_space<vmem>>, vector<1x128xf32>
    %4 = vector.shape_cast %3 : vector<1x128xf32> to vector<128xf32>
    %cst = arith.constant 0.000000e+00 : f32
    %5 = vector.broadcast %cst : f32 to vector<8x8x128xf32>
    %6 = vector.extract_strided_slice %1 {offsets = [0, 0, 0], sizes = [8, 8, 128], strides = [1, 1, 1]} : vector<10x10x128xbf16> to vector<8x8x128xbf16>
    %7 = arith.extf %6 : vector<8x8x128xbf16> to vector<8x8x128xf32>
    %8 = vector.extract_strided_slice %2 {offsets = [0, 0], sizes = [1, 128], strides = [1, 1]} : vector<9x128xf32> to vector<1x128xf32>
    %9 = vector.shape_cast %8 : vector<1x128xf32> to vector<128xf32>
    %10 = vector.shape_cast %9 : vector<128xf32> to vector<1x1x128xf32>
    %11 = vector.broadcast %10 : vector<1x1x128xf32> to vector<8x8x128xf32>
    %12 = arith.mulf %7, %11 : vector<8x8x128xf32>
    %13 = arith.addf %5, %12 : vector<8x8x128xf32>
    %14 = vector.extract_strided_slice %1 {offsets = [0, 1, 0], sizes = [8, 8, 128], strides = [1, 1, 1]} : vector<10x10x128xbf16> to vector<8x8x128xbf16>
    %15 = arith.extf %14 : vector<8x8x128xbf16> to vector<8x8x128xf32>
    %16 = vector.extract_strided_slice %2 {offsets = [1, 0], sizes = [1, 128], strides = [1, 1]} : vector<9x128xf32> to vector<1x128xf32>
    %17 = vector.shape_cast %16 : vector<1x128xf32> to vector<128xf32>
    %18 = vector.shape_cast %17 : vector<128xf32> to vector<1x1x128xf32>
    %19 = vector.broadcast %18 : vector<1x1x128xf32> to vector<8x8x128xf32>
    %20 = arith.mulf %15, %19 : vector<8x8x128xf32>
    %21 = arith.addf %13, %20 : vector<8x8x128xf32>
    %22 = vector.extract_strided_slice %1 {offsets = [0, 2, 0], sizes = [8, 8, 128], strides = [1, 1, 1]} : vector<10x10x128xbf16> to vector<8x8x128xbf16>
    %23 = arith.extf %22 : vector<8x8x128xbf16> to vector<8x8x128xf32>
    %24 = vector.extract_strided_slice %2 {offsets = [2, 0], sizes = [1, 128], strides = [1, 1]} : vector<9x128xf32> to vector<1x128xf32>
    %25 = vector.shape_cast %24 : vector<1x128xf32> to vector<128xf32>
    %26 = vector.shape_cast %25 : vector<128xf32> to vector<1x1x128xf32>
    %27 = vector.broadcast %26 : vector<1x1x128xf32> to vector<8x8x128xf32>
    %28 = arith.mulf %23, %27 : vector<8x8x128xf32>
    %29 = arith.addf %21, %28 : vector<8x8x128xf32>
    %30 = vector.extract_strided_slice %1 {offsets = [1, 0, 0], sizes = [8, 8, 128], strides = [1, 1, 1]} : vector<10x10x128xbf16> to vector<8x8x128xbf16>
    %31 = arith.extf %30 : vector<8x8x128xbf16> to vector<8x8x128xf32>
    %32 = vector.extract_strided_slice %2 {offsets = [3, 0], sizes = [1, 128], strides = [1, 1]} : vector<9x128xf32> to vector<1x128xf32>
    %33 = vector.shape_cast %32 : vector<1x128xf32> to vector<128xf32>
    %34 = vector.shape_cast %33 : vector<128xf32> to vector<1x1x128xf32>
    %35 = vector.broadcast %34 : vector<1x1x128xf32> to vector<8x8x128xf32>
    %36 = arith.mulf %31, %35 : vector<8x8x128xf32>
    %37 = arith.addf %29, %36 : vector<8x8x128xf32>
    %38 = vector.extract_strided_slice %1 {offsets = [1, 1, 0], sizes = [8, 8, 128], strides = [1, 1, 1]} : vector<10x10x128xbf16> to vector<8x8x128xbf16>
    %39 = arith.extf %38 : vector<8x8x128xbf16> to vector<8x8x128xf32>
    %40 = vector.extract_strided_slice %2 {offsets = [4, 0], sizes = [1, 128], strides = [1, 1]} : vector<9x128xf32> to vector<1x128xf32>
    %41 = vector.shape_cast %40 : vector<1x128xf32> to vector<128xf32>
    %42 = vector.shape_cast %41 : vector<128xf32> to vector<1x1x128xf32>
    %43 = vector.broadcast %42 : vector<1x1x128xf32> to vector<8x8x128xf32>
    %44 = arith.mulf %39, %43 : vector<8x8x128xf32>
    %45 = arith.addf %37, %44 : vector<8x8x128xf32>
    %46 = vector.extract_strided_slice %1 {offsets = [1, 2, 0], sizes = [8, 8, 128], strides = [1, 1, 1]} : vector<10x10x128xbf16> to vector<8x8x128xbf16>
    %47 = arith.extf %46 : vector<8x8x128xbf16> to vector<8x8x128xf32>
    %48 = vector.extract_strided_slice %2 {offsets = [5, 0], sizes = [1, 128], strides = [1, 1]} : vector<9x128xf32> to vector<1x128xf32>
    %49 = vector.shape_cast %48 : vector<1x128xf32> to vector<128xf32>
    %50 = vector.shape_cast %49 : vector<128xf32> to vector<1x1x128xf32>
    %51 = vector.broadcast %50 : vector<1x1x128xf32> to vector<8x8x128xf32>
    %52 = arith.mulf %47, %51 : vector<8x8x128xf32>
    %53 = arith.addf %45, %52 : vector<8x8x128xf32>
    %54 = vector.extract_strided_slice %1 {offsets = [2, 0, 0], sizes = [8, 8, 128], strides = [1, 1, 1]} : vector<10x10x128xbf16> to vector<8x8x128xbf16>
    %55 = arith.extf %54 : vector<8x8x128xbf16> to vector<8x8x128xf32>
    %56 = vector.extract_strided_slice %2 {offsets = [6, 0], sizes = [1, 128], strides = [1, 1]} : vector<9x128xf32> to vector<1x128xf32>
    %57 = vector.shape_cast %56 : vector<1x128xf32> to vector<128xf32>
    %58 = vector.shape_cast %57 : vector<128xf32> to vector<1x1x128xf32>
    %59 = vector.broadcast %58 : vector<1x1x128xf32> to vector<8x8x128xf32>
    %60 = arith.mulf %55, %59 : vector<8x8x128xf32>
    %61 = arith.addf %53, %60 : vector<8x8x128xf32>
    %62 = vector.extract_strided_slice %1 {offsets = [2, 1, 0], sizes = [8, 8, 128], strides = [1, 1, 1]} : vector<10x10x128xbf16> to vector<8x8x128xbf16>
    %63 = arith.extf %62 : vector<8x8x128xbf16> to vector<8x8x128xf32>
    %64 = vector.extract_strided_slice %2 {offsets = [7, 0], sizes = [1, 128], strides = [1, 1]} : vector<9x128xf32> to vector<1x128xf32>
    %65 = vector.shape_cast %64 : vector<1x128xf32> to vector<128xf32>
    %66 = vector.shape_cast %65 : vector<128xf32> to vector<1x1x128xf32>
    %67 = vector.broadcast %66 : vector<1x1x128xf32> to vector<8x8x128xf32>
    %68 = arith.mulf %63, %67 : vector<8x8x128xf32>
    %69 = arith.addf %61, %68 : vector<8x8x128xf32>
    %70 = vector.extract_strided_slice %1 {offsets = [2, 2, 0], sizes = [8, 8, 128], strides = [1, 1, 1]} : vector<10x10x128xbf16> to vector<8x8x128xbf16>
    %71 = arith.extf %70 : vector<8x8x128xbf16> to vector<8x8x128xf32>
    %72 = vector.extract_strided_slice %2 {offsets = [8, 0], sizes = [1, 128], strides = [1, 1]} : vector<9x128xf32> to vector<1x128xf32>
    %73 = vector.shape_cast %72 : vector<1x128xf32> to vector<128xf32>
    %74 = vector.shape_cast %73 : vector<128xf32> to vector<1x1x128xf32>
    %75 = vector.broadcast %74 : vector<1x1x128xf32> to vector<8x8x128xf32>
    %76 = arith.mulf %71, %75 : vector<8x8x128xf32>
    %77 = arith.addf %69, %76 : vector<8x8x128xf32>
    %78 = vector.shape_cast %4 : vector<128xf32> to vector<1x1x128xf32>
    %79 = vector.broadcast %78 : vector<1x1x128xf32> to vector<8x8x128xf32>
    %80 = arith.addf %77, %79 : vector<8x8x128xf32>
    %81 = arith.negf %80 : vector<8x8x128xf32>
    %82 = math.exp %81 : vector<8x8x128xf32>
    %cst_7 = arith.constant 1.000000e+00 : f32
    %83 = vector.broadcast %cst_7 : f32 to vector<8x8x128xf32>
    %84 = arith.addf %83, %82 : vector<8x8x128xf32>
    %85 = arith.divf %83, %84 : vector<8x8x128xf32>
    %86 = arith.mulf %80, %85 : vector<8x8x128xf32>
    %87 = arith.truncf %86 : vector<8x8x128xf32> to vector<8x8x128xbf16>
    %c0_8 = arith.constant 0 : index
    %c0_9 = arith.constant 0 : index
    %c0_10 = arith.constant 0 : index
    %c0_11 = arith.constant 0 : index
    %88 = vector.load %arg8[%c0_8, %c0_9, %c0_10, %c0_11] : memref<1x8x8x128xbf16, #tpu.memory_space<vmem>>, vector<1x8x8x128xbf16>
    %89 = vector.shape_cast %88 : vector<1x8x8x128xbf16> to vector<8x8x128xbf16>
    %90 = vector.shape_cast %87 : vector<8x8x128xbf16> to vector<1x8x8x128xbf16>
    tpu.vector_store %arg8[%c0_8, %c0_9, %c0_10, %c0_11], %90 {strides = array<i32>} : memref<1x8x8x128xbf16, #tpu.memory_space<vmem>>, vector<1x8x8x128xbf16>,
    %cst_12 = arith.constant dense<0.000000e+00> : vector<128xf32>
    %91 = vector.multi_reduction <add>, %86, %cst_12 [0, 1] : vector<8x8x128xf32> to vector<128xf32>
    %92 = vector.shape_cast %91 : vector<128xf32> to vector<1x1x128xf32>
    %93 = vector.shape_cast %92 : vector<1x1x128xf32> to vector<1x128xf32>
    %cst_13 = arith.constant 1.562500e-02 : f32
    %94 = vector.broadcast %cst_13 : f32 to vector<1x128xf32>
    %95 = arith.mulf %93, %94 : vector<1x128xf32>
    %c0_14 = arith.constant 0 : index
    %c0_15 = arith.constant 0 : index
    %96 = vector.load %arg4[%c0_14, %c0_15] : memref<128x8xf32, #tpu.memory_space<vmem>>, vector<128x8xf32>
    %cst_16 = arith.constant dense<0.000000e+00> : vector<1x8xf32>
    %97 = tpu.matmul %95, %96, %cst_16 {dimension_numbers = #tpu.dot_dimension_numbers<[1], [0], [0], [1], [0, 0, 1, 1], [], []>} : vector<1x128xf32>, vector<128x8xf32>, vector<1x8xf32> -> vector<1x8xf32>
    %c0_17 = arith.constant 0 : index
    %c0_18 = arith.constant 0 : index
    %98 = vector.load %arg5[%c0_17, %c0_18] : memref<1x8xf32, #tpu.memory_space<vmem>>, vector<1x8xf32>
    %99 = arith.addf %97, %98 : vector<1x8xf32>
    %100 = arith.negf %99 : vector<1x8xf32>
    %101 = math.exp %100 : vector<1x8xf32>
    %cst_19 = arith.constant 1.000000e+00 : f32
    %102 = vector.broadcast %cst_19 : f32 to vector<1x8xf32>
    %103 = arith.addf %102, %101 : vector<1x8xf32>
    %104 = arith.divf %102, %103 : vector<1x8xf32>
    %105 = arith.mulf %99, %104 : vector<1x8xf32>
    %c0_20 = arith.constant 0 : index
    %c0_21 = arith.constant 0 : index
    %106 = vector.load %arg6[%c0_20, %c0_21] : memref<8x128xf32, #tpu.memory_space<vmem>>, vector<8x128xf32>
    %cst_22 = arith.constant dense<0.000000e+00> : vector<1x128xf32>
    %107 = tpu.matmul %105, %106, %cst_22 {dimension_numbers = #tpu.dot_dimension_numbers<[1], [0], [0], [1], [0, 0, 1, 1], [], []>} : vector<1x8xf32>, vector<8x128xf32>, vector<1x128xf32> -> vector<1x128xf32>
    %c0_23 = arith.constant 0 : index
    %c0_24 = arith.constant 0 : index
    %108 = vector.load %arg7[%c0_23, %c0_24] : memref<1x128xf32, #tpu.memory_space<vmem>>, vector<1x128xf32>
    %109 = arith.addf %107, %108 : vector<1x128xf32>
    %110 = arith.negf %109 : vector<1x128xf32>
    %111 = math.exp %110 : vector<1x128xf32>
    %cst_25 = arith.constant 1.000000e+00 : f32
    %112 = vector.broadcast %cst_25 : f32 to vector<1x128xf32>
    %113 = arith.addf %112, %111 : vector<1x128xf32>
    %114 = arith.divf %112, %113 : vector<1x128xf32>
    %c0_26 = arith.constant 0 : index
    %c0_27 = arith.constant 0 : index
    %c0_28 = arith.constant 0 : index
    %115 = vector.load %arg9[%c0_26, %c0_27, %c0_28] : memref<1x1x128xf32, #tpu.memory_space<vmem>>, vector<1x1x128xf32>
    %116 = vector.shape_cast %115 : vector<1x1x128xf32> to vector<1x128xf32>
    %117 = vector.shape_cast %114 : vector<1x128xf32> to vector<1x1x128xf32>
    tpu.vector_store %arg9[%c0_26, %c0_27, %c0_28], %117 {strides = array<i32>} : memref<1x1x128xf32, #tpu.memory_space<vmem>>, vector<1x1x128xf32>,
    return
  }
  func.func @transform_0(%arg0: i32) -> (i32, i32, i32, i32) {
    %c0_i32 = arith.constant 0 : i32
    %c0_i32_0 = arith.constant 0 : i32
    %c0_i32_1 = arith.constant 0 : i32
    %c0_i32_2 = arith.constant 0 : i32
    return %arg0, %c0_i32, %c0_i32_0, %c0_i32_1 : i32, i32, i32, i32
  }
  func.func @transform_1(%arg0: i32) -> (i32, i32) {
    %c0_i32 = arith.constant 0 : i32
    %c0_i32_0 = arith.constant 0 : i32
    %c0_i32_1 = arith.constant 0 : i32
    return %c0_i32, %c0_i32_0 : i32, i32
  }
  func.func @transform_2(%arg0: i32) -> (i32, i32) {
    %c0_i32 = arith.constant 0 : i32
    %c0_i32_0 = arith.constant 0 : i32
    %c0_i32_1 = arith.constant 0 : i32
    return %c0_i32, %c0_i32_0 : i32, i32
  }
  func.func @transform_3(%arg0: i32) -> (i32, i32) {
    %c0_i32 = arith.constant 0 : i32
    %c0_i32_0 = arith.constant 0 : i32
    %c0_i32_1 = arith.constant 0 : i32
    return %c0_i32, %c0_i32_0 : i32, i32
  }
  func.func @transform_4(%arg0: i32) -> (i32, i32) {
    %c0_i32 = arith.constant 0 : i32
    %c0_i32_0 = arith.constant 0 : i32
    %c0_i32_1 = arith.constant 0 : i32
    return %c0_i32, %c0_i32_0 : i32, i32
  }
  func.func @transform_5(%arg0: i32) -> (i32, i32) {
    %c0_i32 = arith.constant 0 : i32
    %c0_i32_0 = arith.constant 0 : i32
    %c0_i32_1 = arith.constant 0 : i32
    return %c0_i32, %c0_i32_0 : i32, i32
  }
  func.func @transform_6(%arg0: i32) -> (i32, i32) {
    %c0_i32 = arith.constant 0 : i32
    %c0_i32_0 = arith.constant 0 : i32
    %c0_i32_1 = arith.constant 0 : i32
    return %c0_i32, %c0_i32_0 : i32, i32
  }
  func.func @transform_7(%arg0: i32) -> (i32, i32, i32, i32) {
    %c0_i32 = arith.constant 0 : i32
    %c0_i32_0 = arith.constant 0 : i32
    %c0_i32_1 = arith.constant 0 : i32
    %c0_i32_2 = arith.constant 0 : i32
    return %arg0, %c0_i32, %c0_i32_0, %c0_i32_1 : i32, i32, i32, i32
  }
  func.func @transform_8(%arg0: i32) -> (i32, i32, i32) {
    %c0_i32 = arith.constant 0 : i32
    %c0_i32_0 = arith.constant 0 : i32
    %c0_i32_1 = arith.constant 0 : i32
    return %arg0, %c0_i32, %c0_i32_0 : i32, i32, i32
  }
}

module attributes {stable_mosaic.version = 11 : i64} {
  func.func @_proj_head_fc_kernel(%arg0: i32, %arg1: i32, %arg2: memref<1x64x128xbf16, #tpu.memory_space<vmem>>, %arg3: memref<1x1x128xf32, #tpu.memory_space<vmem>>, %arg4: memref<1x64x32xbf16, #tpu.memory_space<vmem>>, %arg5: memref<128x32xbf16, #tpu.memory_space<vmem>>, %arg6: memref<1x32xf32, #tpu.memory_space<vmem>>, %arg7: memref<32x128xbf16, #tpu.memory_space<vmem>>, %arg8: memref<1x128xf32, #tpu.memory_space<vmem>>, %arg9: memref<128x128xf32, #tpu.memory_space<vmem>>, %arg10: memref<1x128xf32, #tpu.memory_space<vmem>>, %arg11: memref<1x1x128xf32, #tpu.memory_space<vmem>>, %arg12: memref<1x128xf32, #tpu.memory_space<vmem>>) attributes {dimension_semantics = [#tpu.dimension_semantics<parallel>, #tpu.dimension_semantics<arbitrary>], iteration_bounds = array<i64: 2, 1>, scalar_prefetch = 0 : i64, scratch_operands = 1 : i64, tpu.core_type = #tpu.core_type<tc>, window_params = [{transform_indices = @transform_0, window_bounds = array<i64: 1, 64, 128>}, {transform_indices = @transform_1, window_bounds = array<i64: 1, 1, 128>}, {transform_indices = @transform_2, window_bounds = array<i64: 1, 64, 32>}, {pipeline_mode = #tpu.pipeline_mode<synchronous>, transform_indices = @transform_3, window_bounds = array<i64: 128, 32>}, {pipeline_mode = #tpu.pipeline_mode<synchronous>, transform_indices = @transform_4, window_bounds = array<i64: 1, 32>}, {pipeline_mode = #tpu.pipeline_mode<synchronous>, transform_indices = @transform_5, window_bounds = array<i64: 32, 128>}, {pipeline_mode = #tpu.pipeline_mode<synchronous>, transform_indices = @transform_6, window_bounds = array<i64: 1, 128>}, {pipeline_mode = #tpu.pipeline_mode<synchronous>, transform_indices = @transform_7, window_bounds = array<i64: 128, 128>}, {pipeline_mode = #tpu.pipeline_mode<synchronous>, transform_indices = @transform_8, window_bounds = array<i64: 1, 128>}, {transform_indices = @transform_9, window_bounds = array<i64: 1, 1, 128>}]} {
    %c0_i32 = arith.constant 0 : i32
    %0 = arith.cmpi eq, %arg1, %c0_i32 : i32
    %1 = arith.extui %0 : i1 to i32
    %c0_i32_0 = arith.constant 0 : i32
    %2 = arith.cmpi ne, %1, %c0_i32_0 : i32
    scf.if %2 {
      %cst_26 = arith.constant 0.000000e+00 : f32
      %39 = vector.broadcast %cst_26 : f32 to vector<1x128xf32>
      %c0_27 = arith.constant 0 : index
      %c0_28 = arith.constant 0 : index
      %40 = vector.load %arg12[%c0_27, %c0_28] : memref<1x128xf32, #tpu.memory_space<vmem>>, vector<1x128xf32>
      tpu.vector_store %arg12[%c0_27, %c0_28], %39 {strides = array<i32>} : memref<1x128xf32, #tpu.memory_space<vmem>>, vector<1x128xf32>,
    } else {
    }
    %c0 = arith.constant 0 : index
    %c0_1 = arith.constant 0 : index
    %c0_2 = arith.constant 0 : index
    %3 = vector.load %arg3[%c0, %c0_1, %c0_2] : memref<1x1x128xf32, #tpu.memory_space<vmem>>, vector<1x1x128xf32>
    %4 = vector.shape_cast %3 : vector<1x1x128xf32> to vector<1x128xf32>
    %5 = arith.truncf %4 : vector<1x128xf32> to vector<1x128xbf16>
    %c0_3 = arith.constant 0 : index
    %c0_4 = arith.constant 0 : index
    %c0_5 = arith.constant 0 : index
    %6 = vector.load %arg2[%c0_3, %c0_4, %c0_5] : memref<1x64x128xbf16, #tpu.memory_space<vmem>>, vector<1x64x128xbf16>
    %7 = vector.shape_cast %6 : vector<1x64x128xbf16> to vector<64x128xbf16>
    %8 = vector.broadcast %5 : vector<1x128xbf16> to vector<64x128xbf16>
    %9 = arith.mulf %7, %8 : vector<64x128xbf16>
    %c0_6 = arith.constant 0 : index
    %c0_7 = arith.constant 0 : index
    %10 = vector.load %arg5[%c0_6, %c0_7] : memref<128x32xbf16, #tpu.memory_space<vmem>>, vector<128x32xbf16>
    %cst = arith.constant dense<0.000000e+00> : vector<64x32xf32>
    %11 = tpu.matmul %9, %10, %cst {dimension_numbers = #tpu.dot_dimension_numbers<[1], [0], [0], [1], [0, 0, 1, 1], [], []>} : vector<64x128xbf16>, vector<128x32xbf16>, vector<64x32xf32> -> vector<64x32xf32>
    %c0_8 = arith.constant 0 : index
    %c0_9 = arith.constant 0 : index
    %12 = vector.load %arg6[%c0_8, %c0_9] : memref<1x32xf32, #tpu.memory_space<vmem>>, vector<1x32xf32>
    %13 = vector.broadcast %12 : vector<1x32xf32> to vector<64x32xf32>
    %14 = arith.addf %11, %13 : vector<64x32xf32>
    %c0_10 = arith.constant 0 : index
    %c0_11 = arith.constant 0 : index
    %c0_12 = arith.constant 0 : index
    %15 = vector.load %arg4[%c0_10, %c0_11, %c0_12] : memref<1x64x32xbf16, #tpu.memory_space<vmem>>, vector<1x64x32xbf16>
    %16 = vector.shape_cast %15 : vector<1x64x32xbf16> to vector<64x32xbf16>
    %17 = arith.extf %16 : vector<64x32xbf16> to vector<64x32xf32>
    %18 = arith.addf %14, %17 : vector<64x32xf32>
    %19 = arith.truncf %18 : vector<64x32xf32> to vector<64x32xbf16>
    %c0_13 = arith.constant 0 : index
    %c0_14 = arith.constant 0 : index
    %20 = vector.load %arg7[%c0_13, %c0_14] : memref<32x128xbf16, #tpu.memory_space<vmem>>, vector<32x128xbf16>
    %cst_15 = arith.constant dense<0.000000e+00> : vector<64x128xf32>
    %21 = tpu.matmul %19, %20, %cst_15 {dimension_numbers = #tpu.dot_dimension_numbers<[1], [0], [0], [1], [0, 0, 1, 1], [], []>} : vector<64x32xbf16>, vector<32x128xbf16>, vector<64x128xf32> -> vector<64x128xf32>
    %c0_16 = arith.constant 0 : index
    %c0_17 = arith.constant 0 : index
    %22 = vector.load %arg8[%c0_16, %c0_17] : memref<1x128xf32, #tpu.memory_space<vmem>>, vector<1x128xf32>
    %23 = vector.broadcast %22 : vector<1x128xf32> to vector<64x128xf32>
    %24 = arith.addf %21, %23 : vector<64x128xf32>
    %25 = arith.negf %24 : vector<64x128xf32>
    %26 = math.exp %25 : vector<64x128xf32>
    %cst_18 = arith.constant 1.000000e+00 : f32
    %27 = vector.broadcast %cst_18 : f32 to vector<64x128xf32>
    %28 = arith.addf %27, %26 : vector<64x128xf32>
    %29 = arith.divf %27, %28 : vector<64x128xf32>
    %30 = arith.mulf %24, %29 : vector<64x128xf32>
    %c0_19 = arith.constant 0 : index
    %c0_20 = arith.constant 0 : index
    %31 = vector.load %arg12[%c0_19, %c0_20] : memref<1x128xf32, #tpu.memory_space<vmem>>, vector<1x128xf32>
    %cst_21 = arith.constant dense<0.000000e+00> : vector<128xf32>
    %32 = vector.multi_reduction <add>, %30, %cst_21 [0] : vector<64x128xf32> to vector<128xf32>
    %33 = vector.shape_cast %32 : vector<128xf32> to vector<1x128xf32>
    %34 = arith.addf %31, %33 : vector<1x128xf32>
    %c0_22 = arith.constant 0 : index
    %c0_23 = arith.constant 0 : index
    %35 = vector.load %arg12[%c0_22, %c0_23] : memref<1x128xf32, #tpu.memory_space<vmem>>, vector<1x128xf32>
    tpu.vector_store %arg12[%c0_22, %c0_23], %34 {strides = array<i32>} : memref<1x128xf32, #tpu.memory_space<vmem>>, vector<1x128xf32>,
    %c0_i32_24 = arith.constant 0 : i32
    %36 = arith.cmpi eq, %arg1, %c0_i32_24 : i32
    %37 = arith.extui %36 : i1 to i32
    %c0_i32_25 = arith.constant 0 : i32
    %38 = arith.cmpi ne, %37, %c0_i32_25 : i32
    scf.if %38 {
      %c0_26 = arith.constant 0 : index
      %c0_27 = arith.constant 0 : index
      %39 = vector.load %arg12[%c0_26, %c0_27] : memref<1x128xf32, #tpu.memory_space<vmem>>, vector<1x128xf32>
      %cst_28 = arith.constant 1.562500e-02 : f32
      %40 = vector.broadcast %cst_28 : f32 to vector<1x128xf32>
      %41 = arith.mulf %39, %40 : vector<1x128xf32>
      %c0_29 = arith.constant 0 : index
      %c0_30 = arith.constant 0 : index
      %42 = vector.load %arg9[%c0_29, %c0_30] : memref<128x128xf32, #tpu.memory_space<vmem>>, vector<128x128xf32>
      %cst_31 = arith.constant dense<0.000000e+00> : vector<1x128xf32>
      %43 = tpu.matmul %41, %42, %cst_31 {dimension_numbers = #tpu.dot_dimension_numbers<[1], [0], [0], [1], [0, 0, 1, 1], [], []>} : vector<1x128xf32>, vector<128x128xf32>, vector<1x128xf32> -> vector<1x128xf32>
      %c0_32 = arith.constant 0 : index
      %c0_33 = arith.constant 0 : index
      %44 = vector.load %arg10[%c0_32, %c0_33] : memref<1x128xf32, #tpu.memory_space<vmem>>, vector<1x128xf32>
      %45 = arith.addf %43, %44 : vector<1x128xf32>
      %c0_34 = arith.constant 0 : index
      %c0_35 = arith.constant 0 : index
      %c0_36 = arith.constant 0 : index
      %46 = vector.load %arg11[%c0_34, %c0_35, %c0_36] : memref<1x1x128xf32, #tpu.memory_space<vmem>>, vector<1x1x128xf32>
      %47 = vector.shape_cast %46 : vector<1x1x128xf32> to vector<1x128xf32>
      %48 = vector.shape_cast %45 : vector<1x128xf32> to vector<1x1x128xf32>
      tpu.vector_store %arg11[%c0_34, %c0_35, %c0_36], %48 {strides = array<i32>} : memref<1x1x128xf32, #tpu.memory_space<vmem>>, vector<1x1x128xf32>,
    } else {
    }
    return
  }
  func.func @transform_0(%arg0: i32, %arg1: i32) -> (i32, i32, i32) {
    %c0_i32 = arith.constant 0 : i32
    %c0_i32_0 = arith.constant 0 : i32
    return %arg0, %arg1, %c0_i32 : i32, i32, i32
  }
  func.func @transform_1(%arg0: i32, %arg1: i32) -> (i32, i32, i32) {
    %c0_i32 = arith.constant 0 : i32
    %c0_i32_0 = arith.constant 0 : i32
    %c0_i32_1 = arith.constant 0 : i32
    return %arg0, %c0_i32, %c0_i32_0 : i32, i32, i32
  }
  func.func @transform_2(%arg0: i32, %arg1: i32) -> (i32, i32, i32) {
    %c0_i32 = arith.constant 0 : i32
    %c0_i32_0 = arith.constant 0 : i32
    return %arg0, %arg1, %c0_i32 : i32, i32, i32
  }
  func.func @transform_3(%arg0: i32, %arg1: i32) -> (i32, i32) {
    %c0_i32 = arith.constant 0 : i32
    %c0_i32_0 = arith.constant 0 : i32
    %c0_i32_1 = arith.constant 0 : i32
    return %c0_i32, %c0_i32_0 : i32, i32
  }
  func.func @transform_4(%arg0: i32, %arg1: i32) -> (i32, i32) {
    %c0_i32 = arith.constant 0 : i32
    %c0_i32_0 = arith.constant 0 : i32
    %c0_i32_1 = arith.constant 0 : i32
    return %c0_i32, %c0_i32_0 : i32, i32
  }
  func.func @transform_5(%arg0: i32, %arg1: i32) -> (i32, i32) {
    %c0_i32 = arith.constant 0 : i32
    %c0_i32_0 = arith.constant 0 : i32
    %c0_i32_1 = arith.constant 0 : i32
    return %c0_i32, %c0_i32_0 : i32, i32
  }
  func.func @transform_6(%arg0: i32, %arg1: i32) -> (i32, i32) {
    %c0_i32 = arith.constant 0 : i32
    %c0_i32_0 = arith.constant 0 : i32
    %c0_i32_1 = arith.constant 0 : i32
    return %c0_i32, %c0_i32_0 : i32, i32
  }
  func.func @transform_7(%arg0: i32, %arg1: i32) -> (i32, i32) {
    %c0_i32 = arith.constant 0 : i32
    %c0_i32_0 = arith.constant 0 : i32
    %c0_i32_1 = arith.constant 0 : i32
    return %c0_i32, %c0_i32_0 : i32, i32
  }
  func.func @transform_8(%arg0: i32, %arg1: i32) -> (i32, i32) {
    %c0_i32 = arith.constant 0 : i32
    %c0_i32_0 = arith.constant 0 : i32
    %c0_i32_1 = arith.constant 0 : i32
    return %c0_i32, %c0_i32_0 : i32, i32
  }
  func.func @transform_9(%arg0: i32, %arg1: i32) -> (i32, i32, i32) {
    %c0_i32 = arith.constant 0 : i32
    %c0_i32_0 = arith.constant 0 : i32
    %c0_i32_1 = arith.constant 0 : i32
    return %arg0, %c0_i32, %c0_i32_0 : i32, i32, i32
  }
}

</mosaic_0001>

<bundles_post_ra>
// kernel: effnet_forward.3
= control target key start
LH: loop header
LB: loop body
LE: loop exit
PB: predicated region body
PF: predicated region fallthrough
CT: control target
= control target key end

     0   :  { %vm102_vm0 = vcmask 261120   ;;  %vm400_vm1 = vcmask 257024   ;;  %s1479_s1 = inlined_call_operand.vmem [shape: bf16[32,32], index: 1, kind: input, shape index: {}]   ;;  %s1480_s0 = inlined_call_operand.vmem [shape: bf16[128,32], index: 0, kind: input, shape index: {}]   ;;  %s1481_s3 = inlined_call_operand.vmem [shape: bf16[32,128], index: 3, kind: input, shape index: {}]   ;;  %s1482_s2 = inlined_call_operand.vmem [shape: f32[1,32], index: 2, kind: input, shape index: {}]   ;;  %s1483_s5 = inlined_call_operand.vmem [shape: bf16[128,32], index: 5, kind: output, shape index: {0}]   ;;  %s1484_s4 = inlined_call_operand.vmem [shape: f32[1,128], index: 4, kind: input, shape index: {}]   ;;  %s1485_s6 = inlined_call_operand.vmem [shape: bf16[128,128], index: 6, kind: output, shape index: {1}]  }
   0x1   :  { %v994_v0 = vld [vmem:[%s1479_s1] sm:$0xff]   ;;  %v995_v1 = vld [vmem:[%s1479_s1 + $0x8] sm:$0xff]   ;;  %v998_v4 = vld [vmem:[%s1480_s0 + $0x10] sm:$0xff]  }
   0x2   :  { %954 = vmatprep.subr.bf16.mxu0 %v994_v0  ;;  %v996_v2 = vld [vmem:[%s1480_s0] sm:$0xff]   ;;  %v997_v3 = vld [vmem:[%s1480_s0 + $0x8] sm:$0xff]   ;;  %v999_v5 = vld [vmem:[%s1480_s0 + $0x18] sm:$0xff]  }
   0x3   :  { %955 = vmatpush3.bf16.msra.mxu0 %v994_v0  ;;  %958 = vmatprep.mubr.msk.bf16.mxu0 %vm102_vm0, %v996_v2  ;;  %v1000_v6 = vld [vmem:[%s1480_s0 + $0x20] sm:$0xff]   ;;  %v1001_v7 = vld [vmem:[%s1480_s0 + $0x28] sm:$0xff]   ;;  %v1002_v8 = vld [vmem:[%s1480_s0 + $0x30] sm:$0xff]  }
   0x4   :  { %956 = vmatprep.subr.bf16.mxu0 %v995_v1  ;;  %v1003_v9 = vld [vmem:[%s1480_s0 + $0x38] sm:$0xff]   ;;  %v1004_v10 = vld [vmem:[%s1481_s3] sm:$0xff]   ;;  %v1005_v11 = vld [vmem:[%s1481_s3 + $0x8] sm:$0xff]  }
   0x5   :  { %974 = vmatprep.subr.bf16.mxu1 %v1004_v10  ;;  %v1216_v12 = vld [vmem:[%s1482_s2] ss:$0 sm:$0xff] }
   0x6   :  { %975 = vmatpush3.bf16.msra.mxu1 %v1004_v10 }
   0x7   :  { %957 = vmatpush3.bf16.msra.mxu0 %v995_v1  ;;  %976 = vmatprep.subr.bf16.mxu1 %v1005_v11 }
   0xa   :  { %959 = vmatmul.mubr.msk.bf16.vlgmr.msra.gmra.mrb[0].mxu0 %vm102_vm0, %v997_v3  ;;  %977 = vmatpush3.bf16.msra.mxu1 %v1005_v11 }
   0xb   :  { %962 = vmatprep.mubr.msk.bf16.mxu0 %vm102_vm0, %v998_v4 }
  0x12   :  { %963 = vmatmul.mubr.msk.bf16.gmra.mrb[4].mxu0 %vm102_vm0, %v999_v5 }
  0x13   :  { %966 = vmatprep.mubr.msk.bf16.mxu0 %vm102_vm0, %v1000_v6 }
  0x1a   :  { %967 = vmatmul.mubr.msk.bf16.gmra.mrb[8].mxu0 %vm102_vm0, %v1001_v7 }
  0x1b   :  { %970 = vmatprep.mubr.msk.bf16.mxu0 %vm102_vm0, %v1002_v8 }
  0x22   :  { %971 = vmatmul.mubr.msk.bf16.gmra.mrb[12].mxu0 %vm102_vm0, %v1003_v9 }
  0xdd   :  { %v960_v13 = vpop.f32.mrb[0].mxu0 }
  0xde   :  { %v1219_v14 = vadd.f32 %v960_v13, %v1216_v12  ;;  %v161_v15 = vpop.f32.mrb[1].mxu0 }
  0xdf   :  { %v1222_v16 = vadd.f32 %v1216_v12, %v161_v15  ;;  %v961_v17 = vpop.f32.mrb[2].mxu0 }
  0xe0   :  { %v782_v18 = vmul.f32 -1.442695, %v1219_v14  ;;  %v1226_v19 = vadd.f32 %v961_v17, %v1216_v12  ;;  %v164_v20 = vpop.f32.mrb[3].mxu0 }
  0xe1   :  { %v780_v21 = vmul.f32 -1.442695, %v1222_v16  ;;  %v1230_v22 = vadd.f32 %v1216_v12, %v164_v20 }
  0xe2   :  { %1006 = vpow2.f32 %v782_v18  ;;  %v783_v23 = vmul.f32 -1.442695, %v1226_v19 }
  0xe3   :  { %1008 = vpow2.f32 %v780_v21  ;;  %v781_v24 = vmul.f32 -1.442695, %v1230_v22 }
  0xe4   :  { %1010 = vpow2.f32 %v783_v23 }
  0xe5   :  { %1012 = vpow2.f32 %v781_v24  ;;  %v964_v25 = vpop.f32.mrb[4].mxu0 }
  0xe6   :  { %v1235_v26 = vadd.f32 %v964_v25, %v1216_v12  ;;  %v177_v27 = vpop.f32.mrb[5].mxu0 }
  0xe7   :  { %v1238_v28 = vadd.f32 %v1216_v12, %v177_v27  ;;  %v965_v29 = vpop.f32.mrb[6].mxu0 }
  0xe8   :  { %v786_v30 = vmul.f32 -1.442695, %v1235_v26  ;;  %v1242_v31 = vadd.f32 %v965_v29, %v1216_v12  ;;  %v180_v32 = vpop.f32.mrb[7].mxu0 }
  0xe9   :  { %v784_v33 = vmul.f32 -1.442695, %v1238_v28  ;;  %v1246_v34 = vadd.f32 %v1216_v12, %v180_v32 }
  0xea   :  { %1014 = vpow2.f32 %v786_v30  ;;  %v787_v35 = vmul.f32 -1.442695, %v1242_v31 }
  0xeb   :  { %1016 = vpow2.f32 %v784_v33  ;;  %v785_v36 = vmul.f32 -1.442695, %v1246_v34 }
  0xec   :  { %v1007_v37 = vpop.eup %1006  ;;  %1018 = vpow2.f32 %v787_v35 }
  0xed   :  { %v1009_v38 = vpop.eup %1008  ;;  %v274_v39 = vadd.f32 1.0, %v1007_v37  ;;  %1020 = vpow2.f32 %v785_v36  ;;  %v968_v40 = vpop.f32.mrb[8].mxu0 }
  0xee   :  { %v1011_v41 = vpop.eup %1010  ;;  %v272_v42 = vadd.f32 1.0, %v1009_v38  ;;  %v1251_v43 = vadd.f32 %v968_v40, %v1216_v12  ;;  %v193_v44 = vpop.f32.mrb[9].mxu0 }
  0xef   :  { %v1013_v45 = vpop.eup %1012  ;;  %1022 = vrcp.f32 %v274_v39  ;;  %v275_v46 = vadd.f32 1.0, %v1011_v41  ;;  %v1254_v47 = vadd.f32 %v1216_v12, %v193_v44  ;;  %v969_v48 = vpop.f32.mrb[10].mxu0 }
  0xf0   :  { %1024 = vrcp.f32 %v272_v42  ;;  %v273_v49 = vadd.f32 1.0, %v1013_v45  ;;  %v790_v50 = vmul.f32 -1.442695, %v1251_v43  ;;  %v1258_v51 = vadd.f32 %v969_v48, %v1216_v12  ;;  %v196_v52 = vpop.f32.mrb[11].mxu0 }
  0xf1   :  { %1026 = vrcp.f32 %v275_v46  ;;  %v788_v53 = vmul.f32 -1.442695, %v1254_v47  ;;  %v1262_v54 = vadd.f32 %v1216_v12, %v196_v52 }
  0xf2   :  { %1028 = vrcp.f32 %v273_v49  ;;  %v791_v55 = vmul.f32 -1.442695, %v1258_v51 }
  0xf3   :  { %1030 = vpow2.f32 %v790_v50  ;;  %v789_v56 = vmul.f32 -1.442695, %v1262_v54 }
  0xf4   :  { %v1015_v57 = vpop.eup %1014  ;;  %1032 = vpow2.f32 %v788_v53 }
  0xf5   :  { %v1017_v58 = vpop.eup %1016  ;;  %v278_v59 = vadd.f32 1.0, %v1015_v57  ;;  %1034 = vpow2.f32 %v791_v55  ;;  %v972_v60 = vpop.f32.mrb[12].mxu0 }
  0xf6   :  { %v1019_v61 = vpop.eup %1018  ;;  %v276_v62 = vadd.f32 1.0, %v1017_v58  ;;  %1036 = vpow2.f32 %v789_v56  ;;  %v1267_v63 = vadd.f32 %v972_v60, %v1216_v12  ;;  %v209_v0 = vpop.f32.mrb[13].mxu0 }
  0xf7   :  { %v1021_v1 = vpop.eup %1020  ;;  %1038 = vrcp.f32 %v278_v59  ;;  %v279_v2 = vadd.f32 1.0, %v1019_v61  ;;  %v1270_v3 = vadd.f32 %v1216_v12, %v209_v0  ;;  %v973_v4 = vpop.f32.mrb[14].mxu0 }
  0xf8   :  { %1040 = vrcp.f32 %v276_v62  ;;  %v277_v5 = vadd.f32 1.0, %v1021_v1  ;;  %v794_v6 = vmul.f32 -1.442695, %v1267_v63  ;;  %v1274_v7 = vadd.f32 %v973_v4, %v1216_v12  ;;  %v212_v8 = vpop.f32.mrb[15].mxu0 }
  0xf9   :  { %v1023_v9 = vpop.eup %1022  ;;  %1042 = vrcp.f32 %v279_v2  ;;  %v792_v10 = vmul.f32 -1.442695, %v1270_v3  ;;  %v1278_v11 = vadd.f32 %v1216_v12, %v212_v8 }
  0xfa   :  { %v1025_v13 = vpop.eup %1024  ;;  %v322_v15 = vmul.f32 %v1023_v9, %v1219_v14  ;;  %1044 = vrcp.f32 %v277_v5  ;;  %v795_v17 = vmul.f32 -1.442695, %v1274_v7 }
  0xfb   :  { %v1027_v18 = vpop.eup %1026  ;;  %v320_v20 = vmul.f32 %v1025_v13, %v1222_v16  ;;  %1046 = vpow2.f32 %v794_v6  ;;  %v793_v21 = vmul.f32 -1.442695, %v1278_v11 }
  0xfc   :  { %v1029_v23 = vpop.eup %1028  ;;  %v857_v24 = vpack.c.bf16 %v322_v15, %v322_v15  ;;  %v323_v25 = vmul.f32 %v1027_v18, %v1226_v19  ;;  %1048 = vpow2.f32 %v792_v10 }
  0xfd   :  { %v1031_v12 = vpop.eup %1030  ;;  %v855_v27 = vpack.c.bf16 %v320_v20, %v320_v20  ;;  %v321_v29 = vmul.f32 %v1029_v23, %v1230_v22  ;;  %1050 = vpow2.f32 %v795_v17 }
  0xfe   :  { %v1033_v14 = vpop.eup %1032  ;;  %403 = vst.msk [vmem:[%s1483_s5 + $0x8] sm:$0xf] %vm400_vm1, %v857_v24  ;;  %v337_v16 = vpack.c.bf16 %v323_v25, %v322_v15  ;;  %v858_v30 = vpack.c.bf16 %v323_v25, %v323_v25  ;;  %v282_v32 = vadd.f32 1.0, %v1031_v12  ;;  %1052 = vpow2.f32 %v793_v21 }
  0xff   :  { %v1035_v33 = vpop.eup %1034  ;;  %401 = vst.msk [vmem:[%s1483_s5] sm:$0xf] %vm400_vm1, %v855_v27  ;;  %v856_v19 = vpack.c.bf16 %v321_v29, %v321_v29  ;;  %v280_v35 = vadd.f32 1.0, %v1033_v14  ;;  %v336_v22 = vpack.c.bf16 %v321_v29, %v320_v20 }
 0x100   :  { %v1037_v36 = vpop.eup %1036  ;;  %404 = vst.msk [vmem:[%s1483_s5 + $0xc] sm:$0xf] %vm400_vm1, %v858_v30  ;;  %1054 = vrcp.f32 %v282_v32  ;;  %v283_v37 = vadd.f32 1.0, %v1035_v33 }
 0x101   :  { %v1039_v38 = vpop.eup %1038  ;;  %402 = vst.msk [vmem:[%s1483_s5 + $0x4] sm:$0xf] %vm400_vm1, %v856_v19  ;;  %1056 = vrcp.f32 %v280_v35  ;;  %v281_v39 = vadd.f32 1.0, %v1037_v36  ;;  %978 = vmatprep.mubr.msk.bf16.mxu1 %vm102_vm0, %v336_v22 }
 0x102   :  { %v1041_v40 = vpop.eup %1040  ;;  %v326_v41 = vmul.f32 %v1039_v38, %v1235_v26  ;;  %1058 = vrcp.f32 %v283_v37  ;;  %979 = vmatmul.mubr.msk.bf16.vlgmr.msra.gmra.mrb[0].mxu1 %vm102_vm0, %v337_v16 }
 0x103   :  { %v1043_v42 = vpop.eup %1042  ;;  %v324_v44 = vmul.f32 %v1041_v40, %v1238_v28  ;;  %1060 = vrcp.f32 %v281_v39 }
 0x104   :  { %v1045_v45 = vpop.eup %1044  ;;  %v861_v46 = vpack.c.bf16 %v326_v41, %v326_v41  ;;  %v327_v48 = vmul.f32 %v1043_v42, %v1242_v31 }
 0x105   :  { %v1047_v49 = vpop.eup %1046  ;;  %v859_v50 = vpack.c.bf16 %v324_v44, %v324_v44  ;;  %v325_v52 = vmul.f32 %v1045_v45, %v1246_v34 }
 0x106   :  { %v1049_v53 = vpop.eup %1048  ;;  %407 = vst.msk [vmem:[%s1483_s5 + $0x18] sm:$0xf] %vm400_vm1, %v861_v46  ;;  %v339_v26 = vpack.c.bf16 %v327_v48, %v326_v41  ;;  %v862_v55 = vpack.c.bf16 %v327_v48, %v327_v48  ;;  %v286_v56 = vadd.f32 1.0, %v1047_v49 }
 0x107   :  { %v1051_v57 = vpop.eup %1050  ;;  %405 = vst.msk [vmem:[%s1483_s5 + $0x10] sm:$0xf] %vm400_vm1, %v859_v50  ;;  %v338_v28 = vpack.c.bf16 %v325_v52, %v324_v44  ;;  %v860_v31 = vpack.c.bf16 %v325_v52, %v325_v52  ;;  %v284_v58 = vadd.f32 1.0, %v1049_v53 }
 0x108   :  { %v1053_v59 = vpop.eup %1052  ;;  %408 = vst.msk [vmem:[%s1483_s5 + $0x1c] sm:$0xf] %vm400_vm1, %v862_v55  ;;  %1062 = vrcp.f32 %v286_v56  ;;  %v287_v34 = vadd.f32 1.0, %v1051_v57 }
 0x109   :  { %406 = vst.msk [vmem:[%s1483_s5 + $0x14] sm:$0xf] %vm400_vm1, %v860_v31  ;;  %1064 = vrcp.f32 %v284_v58  ;;  %v285_v60 = vadd.f32 1.0, %v1053_v59  ;;  %982 = vmatprep.mubr.msk.bf16.mxu1 %vm102_vm0, %v338_v28 }
 0x10a   :  { %v1055_v61 = vpop.eup %1054  ;;  %1066 = vrcp.f32 %v287_v34  ;;  %983 = vmatmul.mubr.msk.bf16.gmra.mrb[4].mxu1 %vm102_vm0, %v339_v26 }
 0x10b   :  { %v1057_v62 = vpop.eup %1056  ;;  %v330_v0 = vmul.f32 %v1055_v61, %v1251_v43  ;;  %1068 = vrcp.f32 %v285_v60 }
 0x10c   :  { %v1059_v1 = vpop.eup %1058  ;;  %v328_v2 = vmul.f32 %v1057_v62, %v1254_v47 }
 0x10d   :  { %v1061_v4 = vpop.eup %1060  ;;  %v865_v5 = vpack.c.bf16 %v330_v0, %v330_v0  ;;  %v331_v6 = vmul.f32 %v1059_v1, %v1258_v51 }
 0x10e   :  { %v863_v8 = vpack.c.bf16 %v328_v2, %v328_v2  ;;  %v329_v9 = vmul.f32 %v1061_v4, %v1262_v54 }
 0x10f   :  { %411 = vst.msk [vmem:[%s1483_s5 + $0x28] sm:$0xf] %vm400_vm1, %v865_v5  ;;  %v341_v10 = vpack.c.bf16 %v331_v6, %v330_v0  ;;  %v866_v13 = vpack.c.bf16 %v331_v6, %v331_v6 }
 0x110   :  { %409 = vst.msk [vmem:[%s1483_s5 + $0x20] sm:$0xf] %vm400_vm1, %v863_v8  ;;  %v340_v43 = vpack.c.bf16 %v329_v9, %v328_v2  ;;  %v864_v47 = vpack.c.bf16 %v329_v9, %v329_v9 }
 0x111   :  { %412 = vst.msk [vmem:[%s1483_s5 + $0x2c] sm:$0xf] %vm400_vm1, %v866_v13 }
 0x112   :  { %v1063_v51 = vpop.eup %1062  ;;  %410 = vst.msk [vmem:[%s1483_s5 + $0x24] sm:$0xf] %vm400_vm1, %v864_v47  ;;  %986 = vmatprep.mubr.msk.bf16.mxu1 %vm102_vm0, %v340_v43 }
 0x113   :  { %v1065_v54 = vpop.eup %1064  ;;  %v334_v15 = vmul.f32 %v1063_v51, %v1267_v63  ;;  %987 = vmatmul.mubr.msk.bf16.gmra.mrb[8].mxu1 %vm102_vm0, %v341_v10 }
 0x114   :  { %v1067_v17 = vpop.eup %1066  ;;  %v332_v18 = vmul.f32 %v1065_v54, %v1270_v3 }
 0x115   :  { %v1069_v20 = vpop.eup %1068  ;;  %v869_v21 = vpack.c.bf16 %v334_v15, %v334_v15  ;;  %v335_v23 = vmul.f32 %v1067_v17, %v1274_v7  ;;  %v1373_v7 = vld [vmem:[%s1484_s4] ss:$0 sm:$0xff] }
 0x116   :  { %v867_v24 = vpack.c.bf16 %v332_v18, %v332_v18  ;;  %v333_v25 = vmul.f32 %v1069_v20, %v1278_v11 }
 0x117   :  { %415 = vst.msk [vmem:[%s1483_s5 + $0x38] sm:$0xf] %vm400_vm1, %v869_v21  ;;  %v343_v12 = vpack.c.bf16 %v335_v23, %v334_v15  ;;  %v870_v27 = vpack.c.bf16 %v335_v23, %v335_v23 }
 0x118   :  { %413 = vst.msk [vmem:[%s1483_s5 + $0x30] sm:$0xf] %vm400_vm1, %v867_v24  ;;  %v342_v63 = vpack.c.bf16 %v333_v25, %v332_v18  ;;  %v868_v3 = vpack.c.bf16 %v333_v25, %v333_v25 }
 0x119   :  { %416 = vst.msk [vmem:[%s1483_s5 + $0x3c] sm:$0xf] %vm400_vm1, %v870_v27 }
 0x11a   :  { %414 = vst.msk [vmem:[%s1483_s5 + $0x34] sm:$0xf] %vm400_vm1, %v868_v3  ;;  %990 = vmatprep.mubr.msk.bf16.mxu1 %vm102_vm0, %v342_v63 }
 0x11b   :  { %991 = vmatmul.mubr.msk.bf16.gmra.mrb[12].mxu1 %vm102_vm0, %v343_v12 }
 0x1d5   :  { %v980_v11 = vpop.f32.mrb[0].mxu1 }
 0x1d6   :  { %v1376_v29 = vadd.f32 %v980_v11, %v1373_v7  ;;  %v498_v14 = vpop.f32.mrb[1].mxu1 }
 0x1d7   :  { %v1379_v16 = vadd.f32 %v1373_v7, %v498_v14  ;;  %v981_v30 = vpop.f32.mrb[2].mxu1 }
 0x1d8   :  { %v825_v32 = vmul.f32 -1.442695, %v1376_v29  ;;  %v1383_v33 = vadd.f32 %v981_v30, %v1373_v7  ;;  %v501_v19 = vpop.f32.mrb[3].mxu1 }
 0x1d9   :  { %v823_v35 = vmul.f32 -1.442695, %v1379_v16  ;;  %v1387_v22 = vadd.f32 %v1373_v7, %v501_v19 }
 0x1da   :  { %1070 = vpow2.f32 %v825_v32  ;;  %v826_v36 = vmul.f32 -1.442695, %v1383_v33 }
 0x1db   :  { %1072 = vpow2.f32 %v823_v35  ;;  %v824_v37 = vmul.f32 -1.442695, %v1387_v22 }
 0x1dc   :  { %1074 = vpow2.f32 %v826_v36 }
 0x1dd   :  { %1076 = vpow2.f32 %v824_v37  ;;  %v984_v38 = vpop.f32.mrb[4].mxu1 }
 0x1de   :  { %v1392_v39 = vadd.f32 %v984_v38, %v1373_v7  ;;  %v514_v40 = vpop.f32.mrb[5].mxu1 }
 0x1df   :  { %v1395_v41 = vadd.f32 %v1373_v7, %v514_v40  ;;  %v985_v42 = vpop.f32.mrb[6].mxu1 }
 0x1e0   :  { %v829_v44 = vmul.f32 -1.442695, %v1392_v39  ;;  %v1399_v45 = vadd.f32 %v985_v42, %v1373_v7  ;;  %v517_v46 = vpop.f32.mrb[7].mxu1 }
 0x1e1   :  { %v827_v48 = vmul.f32 -1.442695, %v1395_v41  ;;  %v1403_v49 = vadd.f32 %v1373_v7, %v517_v46 }
 0x1e2   :  { %1078 = vpow2.f32 %v829_v44  ;;  %v830_v50 = vmul.f32 -1.442695, %v1399_v45 }
 0x1e3   :  { %1080 = vpow2.f32 %v827_v48  ;;  %v828_v52 = vmul.f32 -1.442695, %v1403_v49 }
 0x1e4   :  { %v1071_v53 = vpop.eup %1070  ;;  %1082 = vpow2.f32 %v830_v50 }
 0x1e5   :  { %v1073_v26 = vpop.eup %1072  ;;  %v611_v55 = vadd.f32 1.0, %v1071_v53  ;;  %1084 = vpow2.f32 %v828_v52 }
 0x1e6   :  { %v1075_v56 = vpop.eup %1074  ;;  %v609_v57 = vadd.f32 1.0, %v1073_v26  ;;  %v988_v28 = vpop.f32.mrb[8].mxu1 }
 0x1e7   :  { %v1077_v31 = vpop.eup %1076  ;;  %1086 = vrcp.f32 %v611_v55  ;;  %v612_v58 = vadd.f32 1.0, %v1075_v56  ;;  %v1408_v59 = vadd.f32 %v988_v28, %v1373_v7  ;;  %v530_v34 = vpop.f32.mrb[9].mxu1 }
 0x1e8   :  { %1088 = vrcp.f32 %v609_v57  ;;  %v610_v60 = vadd.f32 1.0, %v1077_v31  ;;  %v1411_v61 = vadd.f32 %v1373_v7, %v530_v34  ;;  %v989_v62 = vpop.f32.mrb[10].mxu1 }
 0x1e9   :  { %1090 = vrcp.f32 %v612_v58  ;;  %v833_v0 = vmul.f32 -1.442695, %v1408_v59  ;;  %v1415_v1 = vadd.f32 %v989_v62, %v1373_v7  ;;  %v533_v2 = vpop.f32.mrb[11].mxu1 }
 0x1ea   :  { %1092 = vrcp.f32 %v610_v60  ;;  %v831_v4 = vmul.f32 -1.442695, %v1411_v61  ;;  %v1419_v5 = vadd.f32 %v1373_v7, %v533_v2 }
 0x1eb   :  { %1094 = vpow2.f32 %v833_v0  ;;  %v834_v6 = vmul.f32 -1.442695, %v1415_v1 }
 0x1ec   :  { %v1079_v8 = vpop.eup %1078  ;;  %1096 = vpow2.f32 %v831_v4  ;;  %v832_v9 = vmul.f32 -1.442695, %v1419_v5 }
 0x1ed   :  { %v1081_v10 = vpop.eup %1080  ;;  %v615_v13 = vadd.f32 1.0, %v1079_v8  ;;  %1098 = vpow2.f32 %v834_v6 }
 0x1ee   :  { %v1083_v43 = vpop.eup %1082  ;;  %v613_v47 = vadd.f32 1.0, %v1081_v10  ;;  %1100 = vpow2.f32 %v832_v9  ;;  %v992_v51 = vpop.f32.mrb[12].mxu1 }
 0x1ef   :  { %v1085_v54 = vpop.eup %1084  ;;  %1102 = vrcp.f32 %v615_v13  ;;  %v616_v15 = vadd.f32 1.0, %v1083_v43  ;;  %v1424_v17 = vadd.f32 %v992_v51, %v1373_v7  ;;  %v546_v18 = vpop.f32.mrb[13].mxu1 }
 0x1f0   :  { %1104 = vrcp.f32 %v613_v47  ;;  %v614_v20 = vadd.f32 1.0, %v1085_v54  ;;  %v1427_v21 = vadd.f32 %v1373_v7, %v546_v18  ;;  %v993_v23 = vpop.f32.mrb[14].mxu1 }
 0x1f1   :  { %v1087_v24 = vpop.eup %1086  ;;  %1106 = vrcp.f32 %v616_v15  ;;  %v837_v25 = vmul.f32 -1.442695, %v1424_v17  ;;  %v1431_v12 = vadd.f32 %v993_v23, %v1373_v7  ;;  %v549_v27 = vpop.f32.mrb[15].mxu1 }
 0x1f2   :  { %v1089_v63 = vpop.eup %1088  ;;  %1108 = vrcp.f32 %v614_v20  ;;  %v835_v3 = vmul.f32 -1.442695, %v1427_v21  ;;  %v1435_v11 = vadd.f32 %v1373_v7, %v549_v27  ;;  %v659_v19 = vmul.f32 %v1087_v24, %v1376_v29 }
 0x1f3   :  { %v1091_v14 = vpop.eup %1090  ;;  %1110 = vpow2.f32 %v837_v25  ;;  %v838_v30 = vmul.f32 -1.442695, %v1431_v12  ;;  %v657_v38 = vmul.f32 %v1089_v63, %v1379_v16 }
 0x1f4   :  { %v1093_v32 = vpop.eup %1092  ;;  %v660_v35 = vmul.f32 %v1091_v14, %v1383_v33  ;;  %1112 = vpow2.f32 %v835_v3  ;;  %v836_v36 = vmul.f32 -1.442695, %v1435_v11 }
 0x1f5   :  { %v1095_v37 = vpop.eup %1094  ;;  %v658_v40 = vmul.f32 %v1093_v32, %v1387_v22  ;;  %1114 = vpow2.f32 %v838_v30 }
 0x1f6   :  { %v1097_v7 = vpop.eup %1096  ;;  %v895_v42 = vpack.c.bf16 %v660_v35, %v659_v19  ;;  %v619_v44 = vadd.f32 1.0, %v1095_v37  ;;  %1116 = vpow2.f32 %v836_v36 }
 0x1f7   :  { %v1099_v46 = vpop.eup %1098  ;;  %v890_v48 = vpack.c.bf16 %v658_v40, %v657_v38  ;;  %v617_v50 = vadd.f32 1.0, %v1097_v7 }
 0x1f8   :  { %v1101_v52 = vpop.eup %1100  ;;  %927 = vst [vmem:[%s1485_s6 + $0x8] sm:$0xff] %v895_v42   ;;  %1118 = vrcp.f32 %v619_v44  ;;  %v620_v29 = vadd.f32 1.0, %v1099_v46 }
 0x1f9   :  { %v1103_v33 = vpop.eup %1102  ;;  %891 = vst [vmem:[%s1485_s6] sm:$0xff] %v890_v48   ;;  %1120 = vrcp.f32 %v617_v50  ;;  %v618_v16 = vadd.f32 1.0, %v1101_v52 }
 0x1fa   :  { %v1105_v22 = vpop.eup %1104  ;;  %1122 = vrcp.f32 %v620_v29  ;;  %v663_v55 = vmul.f32 %v1103_v33, %v1392_v39 }
 0x1fb   :  { %v1107_v53 = vpop.eup %1106  ;;  %1124 = vrcp.f32 %v618_v16  ;;  %v661_v28 = vmul.f32 %v1105_v22, %v1395_v41 }
 0x1fc   :  { %v1109_v26 = vpop.eup %1108  ;;  %v664_v56 = vmul.f32 %v1107_v53, %v1399_v45 }
 0x1fd   :  { %v1111_v57 = vpop.eup %1110  ;;  %v662_v31 = vmul.f32 %v1109_v26, %v1403_v49 }
 0x1fe   :  { %v1113_v58 = vpop.eup %1112  ;;  %v905_v34 = vpack.c.bf16 %v664_v56, %v663_v55  ;;  %v623_v60 = vadd.f32 1.0, %v1111_v57 }
 0x1ff   :  { %v1115_v62 = vpop.eup %1114  ;;  %v900_v0 = vpack.c.bf16 %v662_v31, %v661_v28  ;;  %v621_v2 = vadd.f32 1.0, %v1113_v58 }
 0x200   :  { %v1117_v4 = vpop.eup %1116  ;;  %929 = vst [vmem:[%s1485_s6 + $0x18] sm:$0xff] %v905_v34   ;;  %1126 = vrcp.f32 %v623_v60  ;;  %v624_v39 = vadd.f32 1.0, %v1115_v62 }
 0x201   :  { %928 = vst [vmem:[%s1485_s6 + $0x10] sm:$0xff] %v900_v0   ;;  %1128 = vrcp.f32 %v621_v2  ;;  %v622_v41 = vadd.f32 1.0, %v1117_v4 }
 0x202   :  { %v1119_v45 = vpop.eup %1118  ;;  %1130 = vrcp.f32 %v624_v39 }
 0x203   :  { %v1121_v49 = vpop.eup %1120  ;;  %1132 = vrcp.f32 %v622_v41  ;;  %v667_v9 = vmul.f32 %v1119_v45, %v1408_v59 }
 0x204   :  { %v1123_v6 = vpop.eup %1122  ;;  %v665_v13 = vmul.f32 %v1121_v49, %v1411_v61 }
 0x205   :  { %v1125_v8 = vpop.eup %1124  ;;  %v668_v10 = vmul.f32 %v1123_v6, %v1415_v1 }
 0x206   :  { %v666_v43 = vmul.f32 %v1125_v8, %v1419_v5 }
 0x207   :  { %v915_v47 = vpack.c.bf16 %v668_v10, %v667_v9 }
 0x208   :  { %v910_v51 = vpack.c.bf16 %v666_v43, %v665_v13 }
 0x209   :  { %931 = vst [vmem:[%s1485_s6 + $0x28] sm:$0xff] %v915_v47  }
 0x20a   :  { %v1127_v54 = vpop.eup %1126  ;;  %930 = vst [vmem:[%s1485_s6 + $0x20] sm:$0xff] %v910_v51  }
 0x20b   :  { %v1129_v15 = vpop.eup %1128  ;;  %v671_v1 = vmul.f32 %v1127_v54, %v1424_v17 }
 0x20c   :  { %v1131_v18 = vpop.eup %1130  ;;  %v669_v5 = vmul.f32 %v1129_v15, %v1427_v21 }
 0x20d   :  { %v1133_v59 = vpop.eup %1132  ;;  %v672_v61 = vmul.f32 %v1131_v18, %v1431_v12 }
 0x20e   :  { %v670_v20 = vmul.f32 %v1133_v59, %v1435_v11 }
 0x20f   :  { %v925_v23 = vpack.c.bf16 %v672_v61, %v671_v1 }
 0x210   :  { %v920_v24 = vpack.c.bf16 %v670_v20, %v669_v5 }
 0x211   :  { %933 = vst [vmem:[%s1485_s6 + $0x38] sm:$0xff] %v925_v23  }
 0x212   :  { %932 = vst [vmem:[%s1485_s6 + $0x30] sm:$0xff] %v920_v24  }

// kernel: effnet_forward.4
= control target key start
LH: loop header
LB: loop body
LE: loop exit
PB: predicated region body
PF: predicated region fallthrough
CT: control target
= control target key end

     0   :  { %s1471_s27 = smov 0   ;;  %s2003_s0 = inlined_call_operand.vmem [shape: bf16[2,10,10,128], index: 0, kind: input, shape index: {}]   ;;  %s2004_s1 = inlined_call_operand.vmem [shape: f32[9,128], index: 1, kind: input, shape index: {}]   ;;  %s2005_s2 = inlined_call_operand.vmem [shape: f32[1,128], index: 2, kind: input, shape index: {}]   ;;  %s2006_s3 = inlined_call_operand.vmem [shape: f32[128,8], index: 3, kind: input, shape index: {}]   ;;  %s2007_s4 = inlined_call_operand.vmem [shape: f32[1,8], index: 4, kind: input, shape index: {}]   ;;  %s2008_s5 = inlined_call_operand.vmem [shape: f32[8,128], index: 5, kind: input, shape index: {}]   ;;  %s2009_s6 = inlined_call_operand.vmem [shape: f32[1,128], index: 6, kind: input, shape index: {}]   ;;  %s2010_s7 = inlined_call_operand.vmem [shape: bf16[2,8,8,128], index: 7, kind: output, shape index: {0}]   ;;  %s2011_s8 = inlined_call_operand.vmem [shape: f32[2,1,128], index: 8, kind: output, shape index: {1}]  }
   0x1 LB: > { %s1233_s28 = sadd.s32 4294967295, %s1421_s27   ;;  %p1237_p0 = scmp.ge.s32.totalorder %s1421_s27, 1  ;;  %s1421_s27 = sphi %s1471_s27, %s19_s27  }
   0x2   : > { %p265_p1 = scmp.lt.s32.totalorder %s1421_s27, 3 }
   0x4   : > { %p266_p2 = pnand %p1237_p0, %p265_p1 }
   0x6   : > { %269 = sbr.rel (%p266_p2) target bundleno = 655 (0x28f), region = 48 }
   0xd   : > { %v976_v0 = vld [vmem:[%s2006_s3] sm:$0xff]  ;;  %v977_v1 = vld [vmem:[%s2006_s3 + $0x8] sm:$0xff]  ;;  %v978_v2 = vld [vmem:[%s2006_s3 + $0x10] sm:$0xff]  ;;  %v346_v3 = vlaneseq  ;;  %v1423_v4 = vmov 0.0|0.0   ;;  %vm1424_vm0 = vmmov 0   ;;  %v1425_v9 = vmov 0.0  }
   0xe   : > { %1339 = vmatprep.subr.bf16.mxu0 %v1423_v4  ;;  %v1340_v5 = vpack.c.bf16 %v977_v1, %v976_v0  ;;  %v979_v6 = vld [vmem:[%s2006_s3 + $0x18] sm:$0xff]  ;;  %v980_v7 = vld [vmem:[%s2006_s3 + $0x20] sm:$0xff]  ;;  %v981_v8 = vld [vmem:[%s2006_s3 + $0x28] sm:$0xff]  ;;  %1331 = vmatprep.mubr.msk.f32.mxu0 %vm1424_vm0, %v1425_v9  ;;  %p302_p3 = scmp.lt.s32.totalorder %s1233_s28, 1  ;;  %vm410_vm1 = vcmask 1046528   ;;  %vm487_vm2 = vcmask 1045504  }
   0xf   : > { %v1503_v10 = vld [vmem:[%s2006_s3 + $0x30] sm:$0xff]  ;;  %v1508_v11 = vld [vmem:[%s2006_s3 + $0x38] sm:$0xff]  ;;  %v1513_v12 = vld [vmem:[%s2006_s3 + $0x40] sm:$0xff]  ;;  %v1515_v13 = vshrl.u32 %v346_v3, 7  ;;  %1334 = vmatprep.subr.mxu1 %v1425_v9  ;;  %1336 = vmatprep.mubr.msk.f32.mxu1 %vm1424_vm0, %v1425_v9  ;;  %v1343_v14 = vpack.c.bf16 %v979_v6, %v978_v2  ;;  %v1346_v22 = vpack.c.bf16 %v981_v8, %v980_v7  ;;  %vm1072_vm3 = vcmask 64512  }
  0x10   : > { %1341 = vmatpush3.bf16.msra.mxu0 %v1340_v5  ;;  %v1520_v15 = vld [vmem:[%s2006_s3 + $0x48] sm:$0xff]  ;;  %v1525_v16 = vld [vmem:[%s2006_s3 + $0x50] sm:$0xff]  ;;  %v1530_v17 = vld [vmem:[%s2006_s3 + $0x58] sm:$0xff]  ;;  %s2030_s28 = smov (!%p302_p3, %s1233_s28), 1  ;;  %v1349_v23 = vpack.c.bf16 %v1508_v11, %v1503_v10 }
  0x11   : > { %2017 = vst [vmem:[#allocation2_spill] sm:$0xff] %v1515_v13  ;;  %1342 = vmatprep.subr.bf16.mxu0 %v1423_v4  ;;  %v1540_v18 = vld [vmem:[%s2006_s3 + $0x60] sm:$0xff]  ;;  %v1545_v19 = vld [vmem:[%s2006_s3 + $0x68] sm:$0xff]  ;;  %v348_v20 = vsub.s32 0, %v1515_v13  ;;  %v376_v21 = vsub.s32 1, %v1515_v13  ;;  %v1554_v24 = vld [vmem:[%s2006_s3 + $0x70] sm:$0xff]  ;;  %v1352_v27 = vpack.c.bf16 %v1520_v15, %v1513_v12  ;;  %s314_s21 = scalar_lea.vmem %s2011_s8, %s2030_s28 }
  0x12   : > { %v1559_v25 = vld [vmem:[%s2006_s3 + $0x78] sm:$0xff]  ;;  %s1363_s19 = smul.u32 80, %s2030_s28  ;;  %v1565_v26 = vld [vmem:[%s2004_s1] sm:$0xff]  ;;  %v453_v30 = vsub.s32 2, %v1515_v13  ;;  %s1256_s9 = sshll.u32 %s2030_s28, 5 }
  0x13   : > { %2018 = vst [vmem:[#allocation3_spill] sm:$0xff] %v1565_v26  ;;  %v349_v29 = vrot.slane %v1565_v26, %v348_v20  ;;  %v377_v40 = vrot.slane %v1565_v26, %v376_v21  ;;  %s311_s12 = scalar_lea.vmem %s2010_s7, %s1256_s9 }
  0x14   : > { %1344 = vmatpush3.bf16.msra.mxu0 %v1343_v14  ;;  %s1576_s24 = scalar_lea.vmem %s2003_s0, %s1363_s19  ;;  %v1594_v41 = vrot.slane %v1565_v26, %v453_v30 }
  0x15   : > { %1345 = vmatprep.subr.bf16.mxu0 %v1423_v4  ;;  %v315_v37 = vld [vmem:[%s1576_s24] ss:$8 sps:$4 sm:$0xff]   ;;  %v1589_v38 = vld [vmem:[%s1576_s24 + $0x4] sm:$0x1]  ;;  %v318_v39 = vld [vmem:[%s1576_s24 + $0xc] sm:$0x1] }
  0x16   : > { %v319_v42 = vld [vmem:[%s1576_s24 + $0x10] ss:$8 sps:$4 sm:$0xff]   ;;  %v320_v43 = vld [vmem:[%s1576_s24 + $0x14] sm:$0x1]  ;;  %v322_v44 = vld [vmem:[%s1576_s24 + $0x1c] sm:$0x1]  ;;  %v1599_v45 = vunpack.c.l.bf16 %v315_v37  ;;  %v1601_v46 = vunpack.c.h.bf16 %v315_v37  ;;  %v2012_v47 = vunpack.c.l.bf16 %v1589_v38  ;;  %v1604_v48 = vunpack.c.l.bf16 %v318_v39 }
  0x17   : > { %v323_v49 = vld [vmem:[%s1576_s24 + $0x20] ss:$8 sps:$4 sm:$0xff]   ;;  %v324_v50 = vld [vmem:[%s1576_s24 + $0x24] sm:$0x1]  ;;  %v326_v51 = vld [vmem:[%s1576_s24 + $0x2c] sm:$0x1]  ;;  %v1609_v52 = vunpack.c.l.bf16 %v319_v42  ;;  %v1611_v53 = vunpack.c.h.bf16 %v319_v42  ;;  %v1613_v54 = vunpack.c.l.bf16 %v320_v43  ;;  %v1615_v55 = vunpack.c.l.bf16 %v322_v44 }
  0x18   : > { %1347 = vmatpush3.bf16.msra.mxu0 %v1346_v22  ;;  %v327_v56 = vld [vmem:[%s1576_s24 + $0x30] ss:$8 sps:$4 sm:$0xff]   ;;  %v328_v57 = vld [vmem:[%s1576_s24 + $0x34] sm:$0x1]  ;;  %v330_v58 = vld [vmem:[%s1576_s24 + $0x3c] sm:$0x1]  ;;  %v1620_v59 = vunpack.c.l.bf16 %v323_v49  ;;  %v1622_v60 = vunpack.c.h.bf16 %v323_v49  ;;  %v350_v61 = vmul.f32 %v349_v29, %v1599_v45  ;;  %v351_v62 = vmul.f32 %v349_v29, %v1601_v46 }
  0x19   : > { %1348 = vmatprep.subr.bf16.mxu0 %v1423_v4  ;;  %v1627_v63 = vunpack.c.l.bf16 %v327_v56  ;;  %v1629_v0 = vunpack.c.h.bf16 %v327_v56  ;;  %v352_v1 = vmul.f32 %v349_v29, %v1609_v52  ;;  %v353_v2 = vmul.f32 %v349_v29, %v1611_v53 }
  0x1a   : > { %v354_v3 = vmul.f32 %v349_v29, %v1620_v59  ;;  %v355_v5 = vmul.f32 %v349_v29, %v1622_v60  ;;  %v1635_v6 = vunpack.c.l.bf16 %v324_v50  ;;  %v1637_v7 = vunpack.c.l.bf16 %v326_v51 }
  0x1b   : > { %v356_v8 = vmul.f32 %v349_v29, %v1627_v63  ;;  %v357_v9 = vmul.f32 %v349_v29, %v1629_v0  ;;  %v1641_v10 = vunpack.c.l.bf16 %v328_v57  ;;  %v1643_v11 = vunpack.c.l.bf16 %v330_v58 }
  0x1c   : > { %1350 = vmatpush3.bf16.msra.mxu0 %v1349_v23  ;;  %v378_v14 = vmul.f32 %v377_v40, %v1599_v45  ;;  %v379_v20 = vmul.f32 %v377_v40, %v2012_v47  ;;  %v380_v21 = vmul.f32 %v377_v40, %v1601_v46  ;;  %v381_v22 = vmul.f32 %v377_v40, %v1604_v48 }
  0x1d   : > { %1351 = vmatprep.subr.bf16.mxu0 %v1423_v4  ;;  %v382_v30 = vmul.f32 %v377_v40, %v1609_v52  ;;  %v383_v29 = vmul.f32 %v377_v40, %v1613_v54  ;;  %v384_v37 = vmul.f32 %v377_v40, %v1611_v53  ;;  %v385_v39 = vmul.f32 %v377_v40, %v1615_v55 }
  0x1e   : > { %v386_v23 = vmul.f32 %v377_v40, %v1620_v59  ;;  %v387_v42 = vmul.f32 %v377_v40, %v1635_v6  ;;  %v388_v43 = vmul.f32 %v377_v40, %v1622_v60  ;;  %v389_v44 = vmul.f32 %v377_v40, %v1637_v7 }
  0x1f   : > { %v390_v49 = vmul.f32 %v377_v40, %v1627_v63  ;;  %v391_v50 = vmul.f32 %v377_v40, %v1641_v10  ;;  %v392_v51 = vmul.f32 %v377_v40, %v1629_v0  ;;  %v393_v56 = vmul.f32 %v377_v40, %v1643_v11 }
  0x20   : > { %1353 = vmatpush3.bf16.msra.mxu0 %v1352_v27  ;;  %v411_v57 = vrot.slane %v378_v14, 1  ;;  %v412_v58 = vrot.slane %v379_v20, 1  ;;  %v414_v34 = vrot.slane %v380_v21, 1  ;;  %v415_v33 = vrot.slane %v381_v22, 1 }
  0x21   : > { %1354 = vmatprep.subr.bf16.mxu0 %v1423_v4  ;;  %v417_v32 = vrot.slane %v382_v30, 1  ;;  %v418_v31 = vrot.slane %v383_v29, 1  ;;  %v420_v36 = vrot.slane %v384_v37, 1  ;;  %v421_v47 = vrot.slane %v385_v39, 1 }
  0x22   : > { %v413_v35 = vsel %vm410_vm1, %v411_v57, %v412_v58  ;;  %v416_v28 = vsel %vm410_vm1, %v414_v34, %v415_v33  ;;  %v423_v26 = vrot.slane %v386_v23, 1  ;;  %v424_v40 = vrot.slane %v387_v42, 1 }
  0x23   : > { %v419_v13 = vsel %vm410_vm1, %v417_v32, %v418_v31  ;;  %v422_v12 = vsel %vm410_vm1, %v420_v36, %v421_v47  ;;  %v426_v15 = vrot.slane %v388_v43, 1  ;;  %v427_v27 = vrot.slane %v389_v44, 1 }
  0x24   : > { %v2019_v14 = vpack.c.bf16 %v1530_v17, %v1525_v16  ;;  %v425_v20 = vsel %vm410_vm1, %v423_v26, %v424_v40  ;;  %v429_v21 = vrot.slane %v390_v49, 1  ;;  %v430_v22 = vrot.slane %v391_v50, 1 }
  0x25   : > { %v432_v30 = vrot.slane %v392_v51, 1  ;;  %v428_v33 = vsel %vm410_vm1, %v426_v15, %v427_v27  ;;  %v433_v34 = vrot.slane %v393_v56, 1  ;;  %v443_v31 = vadd.f32 %v413_v35, %v350_v61 }
  0x26   : > { %1356 = vmatpush3.bf16.msra.mxu0 %v2019_v14  ;;  %v444_v32 = vadd.f32 %v416_v28, %v351_v62  ;;  %v431_v36 = vsel %vm410_vm1, %v429_v21, %v430_v22  ;;  %v445_v47 = vadd.f32 %v419_v13, %v352_v1  ;;  %v446_v29 = vadd.f32 %v422_v12, %v353_v2  ;;  %v331_v21 = vld [vmem:[%s1576_s24 + $0x40] ss:$8 sps:$4 sm:$0xff]  }
  0x27   : > { %1357 = vmatprep.subr.bf16.mxu0 %v1423_v4  ;;  %v447_v37 = vadd.f32 %v425_v20, %v354_v3  ;;  %v434_v16 = vsel %vm410_vm1, %v432_v30, %v433_v34  ;;  %v448_v17 = vadd.f32 %v428_v33, %v355_v5  ;;  %v449_v39 = vadd.f32 %v431_v36, %v356_v8  ;;  %v332_v36 = vld [vmem:[%s1576_s24 + $0x44] sm:$0x1] }
  0x28   : > { %v455_v26 = vmul.f32 %v1594_v41, %v1599_v45  ;;  %v2020_v23 = vpack.c.bf16 %v1545_v19, %v1540_v18  ;;  %v450_v42 = vadd.f32 %v434_v16, %v357_v9  ;;  %v2021_v35 = vunpack.c.l.bf16 %v1589_v38 }
  0x29   : > { %v457_v13 = vmul.f32 %v1594_v41, %v1601_v46  ;;  %v458_v61 = vmul.f32 %v1594_v41, %v1604_v48  ;;  %v459_v45 = vmul.f32 %v1594_v41, %v1609_v52  ;;  %v460_v18 = vmul.f32 %v1594_v41, %v1613_v54 }
  0x2a   : > { %1359 = vmatpush3.bf16.msra.mxu0 %v2020_v23  ;;  %v456_v28 = vmul.f32 %v1594_v41, %v2021_v35  ;;  %v461_v19 = vmul.f32 %v1594_v41, %v1611_v53  ;;  %v462_v38 = vmul.f32 %v1594_v41, %v1615_v55  ;;  %v463_v62 = vmul.f32 %v1594_v41, %v1620_v59 }
  0x2b   : > { %1360 = vmatprep.subr.bf16.mxu0 %v1423_v4  ;;  %v464_v1 = vmul.f32 %v1594_v41, %v1635_v6  ;;  %v465_v4 = vmul.f32 %v1594_v41, %v1622_v60  ;;  %v466_v2 = vmul.f32 %v1594_v41, %v1637_v7  ;;  %v467_v3 = vmul.f32 %v1594_v41, %v1627_v63 }
  0x2c   : > { %v468_v5 = vmul.f32 %v1594_v41, %v1641_v10  ;;  %v469_v8 = vmul.f32 %v1594_v41, %v1629_v0  ;;  %v470_v9 = vmul.f32 %v1594_v41, %v1643_v11  ;;  %v2022_v43 = vpack.c.bf16 %v1559_v25, %v1554_v24 }
  0x2d   : > { %v488_v44 = vrot.slane %v455_v26, 2  ;;  %v489_v49 = vrot.slane %v456_v28, 2  ;;  %v491_v50 = vrot.slane %v457_v13, 2  ;;  %v492_v51 = vrot.slane %v458_v61, 2  ;;  %v1728_v28 = vld [vmem:[%s1576_s24 + $0x4c] sm:$0x1] }
  0x2e   : > { %1362 = vmatpush3.bf16.msra.mxu0 %v2022_v43  ;;  %v494_v56 = vrot.slane %v459_v45, 2  ;;  %v495_v57 = vrot.slane %v460_v18, 2  ;;  %v497_v58 = vrot.slane %v461_v19, 2  ;;  %v498_v40 = vrot.slane %v462_v38, 2 }
  0x2f   : > { %v490_v12 = vsel %vm487_vm2, %v488_v44, %v489_v49  ;;  %v493_v15 = vsel %vm487_vm2, %v491_v50, %v492_v51  ;;  %v500_v27 = vrot.slane %v463_v62, 2  ;;  %v501_v41 = vrot.slane %v464_v1, 2 }
  0x30   : > { %v496_v24 = vsel %vm487_vm2, %v494_v56, %v495_v57  ;;  %v499_v25 = vsel %vm487_vm2, %v497_v58, %v498_v40  ;;  %v503_v14 = vrot.slane %v465_v4, 2  ;;  %v504_v20 = vrot.slane %v466_v2, 2  ;;  %v2023_v2 = vld [vmem:[#allocation2_spill] sm:$0xff] }
  0x31   : > { %v502_v22 = vsel %vm487_vm2, %v500_v27, %v501_v41  ;;  %v506_v30 = vrot.slane %v467_v3, 2  ;;  %v507_v33 = vrot.slane %v468_v5, 2  ;;  %v509_v34 = vrot.slane %v469_v8, 2  ;;  %v2025_v5 = vld [vmem:[#allocation3_spill] sm:$0xff] }
  0x32   : > { %v505_v16 = vsel %vm487_vm2, %v503_v14, %v504_v20  ;;  %v510_v26 = vrot.slane %v470_v9, 2  ;;  %v520_v23 = vadd.f32 %v490_v12, %v443_v31  ;;  %v521_v35 = vadd.f32 %v493_v15, %v444_v32 }
  0x33   : > { %v508_v13 = vsel %vm487_vm2, %v506_v30, %v507_v33  ;;  %v522_v61 = vadd.f32 %v496_v24, %v445_v47  ;;  %v523_v45 = vadd.f32 %v499_v25, %v446_v29  ;;  %v524_v18 = vadd.f32 %v502_v22, %v447_v37 }
  0x34   : > { %v511_v19 = vsel %vm487_vm2, %v509_v34, %v510_v26  ;;  %v525_v38 = vadd.f32 %v505_v16, %v448_v17  ;;  %v526_v62 = vadd.f32 %v508_v13, %v449_v39  ;;  %v1732_v1 = vunpack.c.l.bf16 %v331_v21 }
  0x35   : > { %v527_v4 = vadd.f32 %v511_v19, %v450_v42  ;;  %v2024_v3 = vsub.s32 3, %v2023_v2  ;;  %v1737_v31 = vunpack.c.l.bf16 %v332_v36  ;;  %v2026_v32 = vsub.s32 4, %v2023_v2 }
  0x36   : > { %v2027_v47 = vsub.s32 5, %v2023_v2  ;;  %v1747_v37 = vunpack.c.h.bf16 %v331_v21  ;;  %v2028_v17 = vsub.s32 6, %v2023_v2  ;;  %v723_v42 = vunpack.c.l.bf16 %v1728_v28 }
  0x37   : > { %v532_v8 = vrot.slane %v2025_v5, %v2024_v3  ;;  %v553_v9 = vrot.slane %v2025_v5, %v2026_v32 }
  0x38   : > { %v1745_v29 = vrot.slane %v2025_v5, %v2027_v47  ;;  %v1752_v39 = vrot.slane %v2025_v5, %v2028_v17 }
  0x39   : > { %v533_v43 = vmul.f32 %v532_v8, %v1601_v46  ;;  %v534_v44 = vmul.f32 %v532_v8, %v1609_v52  ;;  %v535_v49 = vmul.f32 %v532_v8, %v1611_v53  ;;  %v536_v50 = vmul.f32 %v532_v8, %v1620_v59 }
  0x3a   : > { %v537_v51 = vmul.f32 %v532_v8, %v1622_v60  ;;  %v538_v56 = vmul.f32 %v532_v8, %v1627_v63  ;;  %v539_v57 = vmul.f32 %v532_v8, %v1629_v0  ;;  %v540_v58 = vmul.f32 %v532_v8, %v1732_v1 }
  0x3b   : > { %v541_v40 = vadd.f32 %v533_v43, %v520_v23  ;;  %v542_v12 = vadd.f32 %v534_v44, %v521_v35  ;;  %v543_v15 = vadd.f32 %v535_v49, %v522_v61  ;;  %v544_v27 = vadd.f32 %v536_v50, %v523_v45 }
  0x3c   : > { %v545_v41 = vadd.f32 %v537_v51, %v524_v18  ;;  %v546_v24 = vadd.f32 %v538_v56, %v525_v38  ;;  %v547_v25 = vadd.f32 %v539_v57, %v526_v62  ;;  %v548_v14 = vadd.f32 %v540_v58, %v527_v4 }
  0x3d   : > { %v554_v20 = vmul.f32 %v553_v9, %v1601_v46  ;;  %v555_v21 = vmul.f32 %v553_v9, %v1604_v48  ;;  %v556_v22 = vmul.f32 %v553_v9, %v1609_v52  ;;  %v557_v30 = vmul.f32 %v553_v9, %v1613_v54 }
  0x3e   : > { %v558_v33 = vmul.f32 %v553_v9, %v1611_v53  ;;  %v559_v34 = vmul.f32 %v553_v9, %v1615_v55  ;;  %v560_v36 = vmul.f32 %v553_v9, %v1620_v59  ;;  %v561_v16 = vmul.f32 %v553_v9, %v1635_v6 }
  0x3f   : > { %v562_v26 = vmul.f32 %v553_v9, %v1622_v60  ;;  %v563_v23 = vmul.f32 %v553_v9, %v1637_v7  ;;  %v564_v35 = vmul.f32 %v553_v9, %v1627_v63  ;;  %v565_v13 = vmul.f32 %v553_v9, %v1641_v10 }
  0x40   : > { %v566_v61 = vmul.f32 %v553_v9, %v1629_v0  ;;  %v567_v45 = vmul.f32 %v553_v9, %v1643_v11  ;;  %v568_v18 = vmul.f32 %v553_v9, %v1732_v1  ;;  %v569_v19 = vmul.f32 %v553_v9, %v1737_v31 }
  0x41   : > { %v586_v38 = vrot.slane %v554_v20, 1  ;;  %v587_v62 = vrot.slane %v555_v21, 1  ;;  %v589_v4 = vrot.slane %v556_v22, 1  ;;  %v590_v3 = vrot.slane %v557_v30, 1 }
  0x42   : > { %v592_v8 = vrot.slane %v558_v33, 1  ;;  %v593_v32 = vrot.slane %v559_v34, 1  ;;  %v595_v47 = vrot.slane %v560_v36, 1  ;;  %v596_v17 = vrot.slane %v561_v16, 1 }
  0x43   : > { %v588_v43 = vsel %vm410_vm1, %v586_v38, %v587_v62  ;;  %v591_v44 = vsel %vm410_vm1, %v589_v4, %v590_v3  ;;  %v598_v49 = vrot.slane %v562_v26, 1  ;;  %v599_v50 = vrot.slane %v563_v23, 1 }
  0x44   : > { %v594_v51 = vsel %vm410_vm1, %v592_v8, %v593_v32  ;;  %v597_v56 = vsel %vm410_vm1, %v595_v47, %v596_v17  ;;  %v601_v57 = vrot.slane %v564_v35, 1  ;;  %v602_v9 = vrot.slane %v565_v13, 1 }
  0x45   : > { %v600_v58 = vsel %vm410_vm1, %v598_v49, %v599_v50  ;;  %v604_v20 = vrot.slane %v566_v61, 1  ;;  %v605_v21 = vrot.slane %v567_v45, 1  ;;  %v607_v22 = vrot.slane %v568_v18, 1 }
  0x46   : > { %v603_v30 = vsel %vm410_vm1, %v601_v57, %v602_v9  ;;  %v608_v33 = vrot.slane %v569_v19, 1  ;;  %v618_v34 = vadd.f32 %v588_v43, %v541_v40  ;;  %v619_v36 = vadd.f32 %v591_v44, %v542_v12 }
  0x47   : > { %v606_v16 = vsel %vm410_vm1, %v604_v20, %v605_v21  ;;  %v620_v26 = vadd.f32 %v594_v51, %v543_v15  ;;  %v621_v23 = vadd.f32 %v597_v56, %v544_v27  ;;  %v622_v38 = vadd.f32 %v600_v58, %v545_v41 }
  0x48   : > { %v609_v62 = vsel %vm410_vm1, %v607_v22, %v608_v33  ;;  %v623_v4 = vadd.f32 %v603_v30, %v546_v24  ;;  %v624_v35 = vadd.f32 %v606_v16, %v547_v25  ;;  %v630_v13 = vmul.f32 %v1745_v29, %v1601_v46 }
  0x49   : > { %v625_v61 = vadd.f32 %v609_v62, %v548_v14  ;;  %v631_v45 = vmul.f32 %v1745_v29, %v1604_v48  ;;  %v632_v40 = vmul.f32 %v1745_v29, %v1609_v52  ;;  %v633_v12 = vmul.f32 %v1745_v29, %v1613_v54 }
  0x4a   : > { %v634_v15 = vmul.f32 %v1745_v29, %v1611_v53  ;;  %v635_v27 = vmul.f32 %v1745_v29, %v1615_v55  ;;  %v636_v41 = vmul.f32 %v1745_v29, %v1620_v59  ;;  %v637_v46 = vmul.f32 %v1745_v29, %v1635_v6 }
  0x4b   : > { %v638_v48 = vmul.f32 %v1745_v29, %v1622_v60  ;;  %v639_v24 = vmul.f32 %v1745_v29, %v1637_v7  ;;  %v640_v25 = vmul.f32 %v1745_v29, %v1627_v63  ;;  %v641_v14 = vmul.f32 %v1745_v29, %v1641_v10 }
  0x4c   : > { %v642_v18 = vmul.f32 %v1745_v29, %v1629_v0  ;;  %v643_v19 = vmul.f32 %v1745_v29, %v1643_v11  ;;  %v644_v3 = vmul.f32 %v1745_v29, %v1732_v1  ;;  %v645_v8 = vmul.f32 %v1745_v29, %v1737_v31 }
  0x4d   : > { %v662_v32 = vrot.slane %v630_v13, 2  ;;  %v663_v47 = vrot.slane %v631_v45, 2  ;;  %v665_v17 = vrot.slane %v632_v40, 2  ;;  %v666_v43 = vrot.slane %v633_v12, 2 }
  0x4e   : > { %v668_v44 = vrot.slane %v634_v15, 2  ;;  %v669_v49 = vrot.slane %v635_v27, 2  ;;  %v671_v50 = vrot.slane %v636_v41, 2  ;;  %v672_v51 = vrot.slane %v637_v46, 2 }
  0x4f   : > { %v664_v56 = vsel %vm487_vm2, %v662_v32, %v663_v47  ;;  %v667_v57 = vsel %vm487_vm2, %v665_v17, %v666_v43  ;;  %v674_v9 = vrot.slane %v638_v48, 2  ;;  %v675_v58 = vrot.slane %v639_v24, 2 }
  0x50   : > { %v670_v20 = vsel %vm487_vm2, %v668_v44, %v669_v49  ;;  %v673_v21 = vsel %vm487_vm2, %v671_v50, %v672_v51  ;;  %v677_v22 = vrot.slane %v640_v25, 2  ;;  %v678_v29 = vrot.slane %v641_v14, 2 }
  0x51   : > { %v676_v30 = vsel %vm487_vm2, %v674_v9, %v675_v58  ;;  %v680_v33 = vrot.slane %v642_v18, 2  ;;  %v681_v16 = vrot.slane %v643_v19, 2  ;;  %v683_v62 = vrot.slane %v644_v3, 2 }
  0x52   : > { %v679_v13 = vsel %vm487_vm2, %v677_v22, %v678_v29  ;;  %v684_v45 = vrot.slane %v645_v8, 2  ;;  %v694_v40 = vadd.f32 %v664_v56, %v618_v34  ;;  %v695_v12 = vadd.f32 %v667_v57, %v619_v36 }
  0x53   : > { %v682_v15 = vsel %vm487_vm2, %v680_v33, %v681_v16  ;;  %v696_v27 = vadd.f32 %v670_v20, %v620_v26  ;;  %v697_v41 = vadd.f32 %v673_v21, %v621_v23  ;;  %v698_v46 = vadd.f32 %v676_v30, %v622_v38  ;;  %v1838_v26 = vld [vmem:[%s2004_s1 + $0x8] ss:$0 sm:$0xff] }
  0x54   : > { %v685_v48 = vsel %vm487_vm2, %v683_v62, %v684_v45  ;;  %v699_v24 = vadd.f32 %v679_v13, %v623_v4  ;;  %v700_v25 = vadd.f32 %v682_v15, %v624_v35  ;;  %v707_v14 = vmul.f32 %v1752_v39, %v1609_v52 }
  0x55   : > { %v701_v18 = vadd.f32 %v685_v48, %v625_v61  ;;  %v708_v19 = vmul.f32 %v1752_v39, %v1611_v53  ;;  %v709_v34 = vmul.f32 %v1752_v39, %v1620_v59  ;;  %v710_v36 = vmul.f32 %v1752_v39, %v1622_v60 }
  0x56   : > { %v711_v23 = vmul.f32 %v1752_v39, %v1627_v63  ;;  %v712_v38 = vmul.f32 %v1752_v39, %v1629_v0  ;;  %v713_v4 = vmul.f32 %v1752_v39, %v1732_v1  ;;  %v714_v35 = vmul.f32 %v1752_v39, %v1747_v37 }
  0x57   : > { %v715_v61 = vadd.f32 %v707_v14, %v694_v40  ;;  %v716_v3 = vadd.f32 %v708_v19, %v695_v12  ;;  %v1848_v8 = vadd.f32 %v709_v34, %v696_v27  ;;  %v1850_v32 = vadd.f32 %v710_v36, %v697_v41 }
  0x58   : > { %v1852_v47 = vadd.f32 %v711_v23, %v698_v46  ;;  %v1854_v17 = vadd.f32 %v712_v38, %v699_v24  ;;  %v1856_v43 = vadd.f32 %v713_v4, %v700_v25  ;;  %v1858_v44 = vadd.f32 %v714_v35, %v701_v18 }
  0x59   : > { %v726_v49 = vsub.s32 7, %v2023_v2  ;;  %v1863_v50 = vmul.f32 %v1838_v26, %v1609_v52  ;;  %v1867_v39 = vmul.f32 %v1838_v26, %v1613_v54  ;;  %v1871_v51 = vmul.f32 %v1838_v26, %v1611_v53 }
  0x5a   : > { %v1875_v56 = vmul.f32 %v1838_v26, %v1615_v55  ;;  %v1879_v57 = vmul.f32 %v1838_v26, %v1620_v59  ;;  %v1883_v2 = vmul.f32 %v1838_v26, %v1635_v6  ;;  %v1887_v9 = vmul.f32 %v1838_v26, %v1622_v60 }
  0x5b   : > { %v727_v58 = vrot.slane %v2025_v5, %v726_v49  ;;  %v1892_v20 = vmul.f32 %v1838_v26, %v1637_v7  ;;  %v1896_v21 = vmul.f32 %v1838_v26, %v1627_v63  ;;  %v1900_v22 = vmul.f32 %v1838_v26, %v1641_v10 }
  0x5c   : > { %v1904_v29 = vmul.f32 %v1838_v26, %v1629_v0  ;;  %v1908_v30 = vmul.f32 %v1838_v26, %v1643_v11  ;;  %v1912_v5 = vmul.f32 %v1838_v26, %v1732_v1  ;;  %v1916_v33 = vmul.f32 %v1838_v26, %v1737_v31 }
  0x5d   : > { %v728_v16 = vmul.f32 %v727_v58, %v1609_v52  ;;  %v729_v62 = vmul.f32 %v727_v58, %v1613_v54  ;;  %v730_v13 = vmul.f32 %v727_v58, %v1611_v53  ;;  %v731_v45 = vmul.f32 %v727_v58, %v1615_v55 }
  0x5e   : > { %v732_v40 = vmul.f32 %v727_v58, %v1620_v59  ;;  %v733_v12 = vmul.f32 %v727_v58, %v1635_v6  ;;  %v734_v15 = vmul.f32 %v727_v58, %v1622_v60  ;;  %v735_v27 = vmul.f32 %v727_v58, %v1637_v7 }
  0x5f   : > { %v736_v41 = vmul.f32 %v727_v58, %v1627_v63  ;;  %v737_v46 = vmul.f32 %v727_v58, %v1641_v10  ;;  %v738_v52 = vmul.f32 %v727_v58, %v1629_v0  ;;  %v739_v54 = vmul.f32 %v727_v58, %v1643_v11 }
  0x60   : > { %v740_v53 = vmul.f32 %v727_v58, %v1732_v1  ;;  %v741_v55 = vmul.f32 %v727_v58, %v1737_v31  ;;  %v742_v59 = vmul.f32 %v727_v58, %v1747_v37  ;;  %v743_v6 = vmul.f32 %v727_v58, %v723_v42 }
  0x61   : > { %v760_v60 = vrot.slane %v728_v16, 1  ;;  %v761_v48 = vrot.slane %v729_v62, 1  ;;  %v763_v7 = vrot.slane %v730_v13, 1  ;;  %v764_v24 = vrot.slane %v731_v45, 1 }
  0x62   : > { %v766_v63 = vrot.slane %v732_v40, 1  ;;  %v767_v25 = vrot.slane %v733_v12, 1  ;;  %v769_v10 = vrot.slane %v734_v15, 1  ;;  %v770_v14 = vrot.slane %v735_v27, 1 }
  0x63   : > { %v762_v0 = vsel %vm410_vm1, %v760_v60, %v761_v48  ;;  %v765_v11 = vsel %vm410_vm1, %v763_v7, %v764_v24  ;;  %v772_v1 = vrot.slane %v736_v41, 1  ;;  %v773_v18 = vrot.slane %v737_v46, 1 }
  0x64   : > { %v768_v31 = vsel %vm410_vm1, %v766_v63, %v767_v25  ;;  %v771_v19 = vsel %vm410_vm1, %v769_v10, %v770_v14  ;;  %v775_v34 = vrot.slane %v738_v52, 1  ;;  %v776_v36 = vrot.slane %v739_v54, 1 }
  0x65   : > { %v774_v23 = vsel %vm410_vm1, %v772_v1, %v773_v18  ;;  %v778_v38 = vrot.slane %v740_v53, 1  ;;  %v779_v4 = vrot.slane %v741_v55, 1  ;;  %v781_v35 = vrot.slane %v742_v59, 1 }
  0x66   : > { %v777_v49 = vsel %vm410_vm1, %v775_v34, %v776_v36  ;;  %v782_v58 = vrot.slane %v743_v6, 1  ;;  %v792_v16 = vadd.f32 %v762_v0, %v715_v61  ;;  %v793_v62 = vadd.f32 %v765_v11, %v716_v3 }
  0x67   : > { %v780_v13 = vsel %vm410_vm1, %v778_v38, %v779_v4  ;;  %v794_v45 = vadd.f32 %v768_v31, %v1848_v8  ;;  %v795_v40 = vadd.f32 %v771_v19, %v1850_v32  ;;  %v796_v12 = vadd.f32 %v774_v23, %v1852_v47 }
  0x68   : > { %v783_v15 = vsel %vm410_vm1, %v781_v35, %v782_v58  ;;  %v797_v27 = vadd.f32 %v777_v49, %v1854_v17  ;;  %v798_v41 = vadd.f32 %v780_v13, %v1856_v43  ;;  %v818_v46 = vmul.f32 %v1838_v26, %v1747_v37 }
  0x69   : > { %v799_v61 = vadd.f32 %v783_v15, %v1858_v44  ;;  %v819_v3 = vmul.f32 %v1838_v26, %v723_v42  ;;  %v836_v8 = vrot.slane %v1863_v50, 2  ;;  %v837_v32 = vrot.slane %v1867_v39, 2 }
  0x6a   : > { %v839_v47 = vrot.slane %v1871_v51, 2  ;;  %v840_v52 = vrot.slane %v1875_v56, 2  ;;  %v842_v17 = vrot.slane %v1879_v57, 2  ;;  %v843_v43 = vrot.slane %v1883_v2, 2 }
  0x6b   : > { %v838_v37 = vsel %vm487_vm2, %v836_v8, %v837_v32  ;;  %v845_v44 = vrot.slane %v1887_v9, 2  ;;  %v846_v28 = vrot.slane %v1892_v20, 2  ;;  %v848_v42 = vrot.slane %v1896_v21, 2  ;;  %v1242_v20 = vld [vmem:[%s2005_s2] ss:$0 sm:$0xff] }
  0x6c   : > { %v841_v26 = vsel %vm487_vm2, %v839_v47, %v840_v52  ;;  %v844_v50 = vsel %vm487_vm2, %v842_v17, %v843_v43  ;;  %v849_v39 = vrot.slane %v1900_v22, 2  ;;  %v851_v51 = vrot.slane %v1904_v29, 2 }
  0x6d   : > { %v847_v56 = vsel %vm487_vm2, %v845_v44, %v846_v28  ;;  %v852_v57 = vrot.slane %v1908_v30, 2  ;;  %v854_v2 = vrot.slane %v1912_v5, 2  ;;  %v855_v9 = vrot.slane %v1916_v33, 2 }
  0x6e   : > { %v850_v21 = vsel %vm487_vm2, %v848_v42, %v849_v39  ;;  %v857_v54 = vrot.slane %v818_v46, 2  ;;  %v858_v53 = vrot.slane %v819_v3, 2  ;;  %v868_v55 = vadd.f32 %v838_v37, %v792_v16 }
  0x6f   : > { %v853_v22 = vsel %vm487_vm2, %v851_v51, %v852_v57  ;;  %v856_v29 = vsel %vm487_vm2, %v854_v2, %v855_v9  ;;  %v869_v59 = vadd.f32 %v841_v26, %v793_v62  ;;  %v870_v6 = vadd.f32 %v844_v50, %v794_v45 }
  0x70   : > { %v859_v30 = vsel %vm487_vm2, %v857_v54, %v858_v53  ;;  %v871_v5 = vadd.f32 %v847_v56, %v795_v40  ;;  %v872_v60 = vadd.f32 %v850_v21, %v796_v12  ;;  %v873_v33 = vadd.f32 %v853_v22, %v797_v27 }
  0x71   : > { %v874_v48 = vadd.f32 %v856_v29, %v798_v41  ;;  %v875_v7 = vadd.f32 %v859_v30, %v799_v61  ;;  %v882_v24 = vadd.f32 %v1242_v20, %v868_v55  ;;  %v883_v63 = vadd.f32 %v1242_v20, %v869_v59 }
  0x72   : > { %v884_v25 = vadd.f32 %v1242_v20, %v870_v6  ;;  %v885_v10 = vadd.f32 %v1242_v20, %v871_v5  ;;  %v886_v14 = vadd.f32 %v1242_v20, %v872_v60  ;;  %v887_v0 = vadd.f32 %v1242_v20, %v873_v33 }
  0x73   : > { %v1979_v11 = vadd.f32 %v1242_v20, %v874_v48  ;;  %v1243_v1 = vmul.f32 -1.442695, %v882_v24  ;;  %v1244_v18 = vmul.f32 -1.442695, %v883_v63  ;;  %v889_v31 = vadd.f32 %v1242_v20, %v875_v7 }
  0x74   : > { %v1245_v19 = vmul.f32 -1.442695, %v884_v25  ;;  %v1246_v34 = vmul.f32 -1.442695, %v885_v10  ;;  %v1247_v36 = vmul.f32 -1.442695, %v886_v14 }
  0x75   : > { %1375 = vpow2.f32 %v1243_v1  ;;  %v1248_v23 = vmul.f32 -1.442695, %v887_v0  ;;  %v1249_v38 = vmul.f32 -1.442695, %v1979_v11  ;;  %v1250_v4 = vmul.f32 -1.442695, %v889_v31 }
  0x76   : > { %1377 = vpow2.f32 %v1244_v18 }
  0x77   : > { %1379 = vpow2.f32 %v1245_v19 }
  0x78   : > { %1381 = vpow2.f32 %v1246_v34 }
  0x79   : > { %1383 = vpow2.f32 %v1247_v36  ;;  %v1071_v36 = vld [vmem:[%s2009_s6] sm:$0x1] }
  0x7a   : > { %1385 = vpow2.f32 %v1248_v23 }
  0x7b   : > { %1387 = vpow2.f32 %v1249_v38 }
  0x7c   : > { %1389 = vpow2.f32 %v1250_v4 }
  0x7f   : > { %v1376_v35 = vpop.eup %1375 }
  0x80   : > { %v1378_v49 = vpop.eup %1377  ;;  %v914_v58 = vadd.f32 1.0, %v1376_v35 }
  0x81   : > { %v1380_v16 = vpop.eup %1379  ;;  %v915_v62 = vadd.f32 1.0, %v1378_v49 }
  0x82   : > { %v1382_v13 = vpop.eup %1381  ;;  %v916_v45 = vadd.f32 1.0, %v1380_v16  ;;  %1391 = vrcp.f32 %v914_v58 }
  0x83   : > { %v1384_v40 = vpop.eup %1383  ;;  %v917_v12 = vadd.f32 1.0, %v1382_v13  ;;  %1393 = vrcp.f32 %v915_v62 }
  0x84   : > { %v1386_v15 = vpop.eup %1385  ;;  %v918_v27 = vadd.f32 1.0, %v1384_v40  ;;  %1395 = vrcp.f32 %v916_v45 }
  0x85   : > { %v1388_v41 = vpop.eup %1387  ;;  %v919_v46 = vadd.f32 1.0, %v1386_v15  ;;  %1397 = vrcp.f32 %v917_v12 }
  0x86   : > { %v1390_v61 = vpop.eup %1389  ;;  %v920_v3 = vadd.f32 1.0, %v1388_v41  ;;  %1399 = vrcp.f32 %v918_v27 }
  0x87   : > { %v921_v8 = vadd.f32 1.0, %v1390_v61  ;;  %1401 = vrcp.f32 %v919_v46 }
  0x88   : > { %1403 = vrcp.f32 %v920_v3 }
  0x89   : > { %1405 = vrcp.f32 %v921_v8 }
  0x8c   : > { %v1392_v32 = vpop.eup %1391 }
  0x8d   : > { %v1394_v47 = vpop.eup %1393  ;;  %v938_v52 = vmul.f32 %v1392_v32, %v882_v24 }
  0x8e   : > { %v1396_v17 = vpop.eup %1395  ;;  %v939_v43 = vmul.f32 %v1394_v47, %v883_v63 }
  0x8f   : > { %v1398_v37 = vpop.eup %1397  ;;  %v940_v44 = vmul.f32 %v1396_v17, %v884_v25  ;;  %v1070_v25 = vld [vmem:[%s2008_s5] sm:$0xff] }
  0x90   : > { %v1400_v28 = vpop.eup %1399  ;;  %v941_v42 = vmul.f32 %v1398_v37, %v885_v10  ;;  %v1260_v26 = vpack.c.bf16 %v939_v43, %v938_v52  ;;  %v962_v50 = vadd.f32 %v939_v43, %v938_v52  ;;  %1335 = vmatpush3.msra.mxu1 %v1070_v25  ;;  %v992_v10 = vld [vmem:[%s2007_s4] sm:$0x1] }
  0x91   : > { %v1402_v39 = vpop.eup %1401  ;;  %v942_v56 = vmul.f32 %v1400_v28, %v886_v14 }
  0x92   : > { %v1404_v51 = vpop.eup %1403  ;;  %v943_v57 = vmul.f32 %v1402_v39, %v887_v0  ;;  %1261 = vst [vmem:[%s311_s12] sm:$0xff] %v1260_v26   ;;  %v1265_v2 = vpack.c.bf16 %v941_v42, %v940_v44  ;;  %v963_v9 = vadd.f32 %v962_v50, %v940_v44 }
  0x93   : > { %v1406_v20 = vpop.eup %1405  ;;  %v944_v21 = vmul.f32 %v1404_v51, %v1979_v11 }
  0x94   : > { %v945_v54 = vmul.f32 %v1406_v20, %v889_v31  ;;  %1277 = vst [vmem:[%s311_s12 + $0x8] sm:$0xff] %v1265_v2   ;;  %v1270_v53 = vpack.c.bf16 %v943_v57, %v942_v56  ;;  %v964_v55 = vadd.f32 %v963_v9, %v941_v42 }
  0x96   : > { %1278 = vst [vmem:[%s311_s12 + $0x10] sm:$0xff] %v1270_v53   ;;  %v1275_v22 = vpack.c.bf16 %v945_v54, %v944_v21  ;;  %v965_v29 = vadd.f32 %v964_v55, %v942_v56 }
  0x98   : > { %1279 = vst [vmem:[%s311_s12 + $0x18] sm:$0xff] %v1275_v22   ;;  %v966_v59 = vadd.f32 %v965_v29, %v943_v57 }
  0x9a   : > { %v967_v6 = vadd.f32 %v966_v59, %v944_v21 }
  0x9c   : > { %v968_v30 = vadd.f32 %v967_v6, %v945_v54 }
  0x9e   : > { %v969_v5 = vrot.slane %v968_v30, 4 }
  0xa0   : > { %v970_v60 = vadd.f32 %v969_v5, %v968_v30 }
  0xa2   : > { %v971_v33 = vrot.slane %v970_v60, 2 }
  0xa4   : > { %v972_v48 = vadd.f32 %v971_v33, %v970_v60 }
  0xa6   : > { %v973_v7 = vrot.slane %v972_v48, 1 }
  0xa8   : > { %v974_v24 = vadd.f32 %v973_v7, %v972_v48 }
  0xaa   : > { %v975_v63 = vmul.f32 0.015625, %v974_v24 }
  0xac   : > { %1332 = vmatmul.mubr.f32.vlgmr.msra.gmra.mrb[0].mxu0 %v975_v63 }
 0x17f   : > { %v1059_v14 = vpop.f32.mrb[0].mxu0 }
 0x180   : > { %v1060_v0 = vadd.f32 %v1059_v14, %v992_v10  ;;  %v1333_v11 = vpop.f32.mrb[1].mxu0 }
 0x182   : > { %v1251_v1 = vmul.f32 -1.442695, %v1060_v0 }
 0x184   : > { %1407 = vpow2.f32 %v1251_v1 }
 0x18e   : > { %v1408_v18 = vpop.eup %1407 }
 0x18f   : > { %v1066_v31 = vadd.f32 1.0, %v1408_v18 }
 0x191   : > { %1409 = vrcp.f32 %v1066_v31 }
 0x19b   : > { %v1410_v19 = vpop.eup %1409 }
 0x19c   : > { %v1069_v34 = vmul.f32 %v1410_v19, %v1060_v0 }
 0x19e   : > { %1337 = vmatmul.mubr.msk.f32.vlgmr.msra.gmra.mrb[0].mxu1 %vm1072_vm3, %v1069_v34 }
 0x271   : > { %v1142_v23 = vpop.f32.mrb[0].mxu1 }
 0x272   : > { %v1143_v38 = vadd.f32 %v1142_v23, %v1071_v36  ;;  %v1338_v4 = vpop.f32.mrb[1].mxu1 }
 0x274   : > { %v1253_v35 = vmul.f32 -1.442695, %v1143_v38 }
 0x276   : > { %1411 = vpow2.f32 %v1253_v35 }
 0x280   : > { %v1412_v49 = vpop.eup %1411 }
 0x281   : > { %v1149_v58 = vadd.f32 1.0, %v1412_v49 }
 0x283   : > { %1413 = vrcp.f32 %v1149_v58 }
 0x28d   : > { %v1414_v16 = vpop.eup %1413 }
 0x28e   : > { %1152 = vst [vmem:[%s314_s21] sm:$0x1] %v1414_v16 }
 0x28f PF: > { %s19_s27 = sadd.s32 1, %s1421_s27  }
 0x290   : > { %p16_p4 = scmp.ge.s32.totalorder %s19_s27, 4  }
 0x292   :  { %18 = sbr.rel (!%p16_p4) target bundleno = 1 (0x1), region = 90 }

// kernel: effnet_forward.5
= control target key start
LH: loop header
LB: loop body
LE: loop exit
PB: predicated region body
PF: predicated region fallthrough
CT: control target
= control target key end

     0   :  { %14 = vsyncpa [#allocation4], 0  ;;  %s1659_s0 = inlined_call_operand.vmem [shape: bf16[2,64,128], index: 0, kind: input, shape index: {}]   ;;  %s1660_s1 = inlined_call_operand.vmem [shape: f32[2,1,128], index: 1, kind: input, shape index: {}]   ;;  %s1661_s2 = inlined_call_operand.vmem [shape: bf16[2,64,32], index: 2, kind: input, shape index: {}]   ;;  %s1662_s3 = inlined_call_operand.vmem [shape: bf16[128,32], index: 3, kind: input, shape index: {}]   ;;  %s1663_s4 = inlined_call_operand.vmem [shape: f32[1,32], index: 4, kind: input, shape index: {}]   ;;  %s1664_s5 = inlined_call_operand.vmem [shape: bf16[32,128], index: 5, kind: input, shape index: {}]   ;;  %s1665_s6 = inlined_call_operand.vmem [shape: f32[1,128], index: 6, kind: input, shape index: {}]   ;;  %s1666_s7 = inlined_call_operand.vmem [shape: f32[128,128], index: 7, kind: input, shape index: {}]   ;;  %s1667_s8 = inlined_call_operand.vmem [shape: f32[1,128], index: 8, kind: input, shape index: {}]   ;;  %s1668_s9 = inlined_call_operand.hbm [shape: f32[2,1,128], index: 9, kind: output, shape index: {}]  }
   0x1   :  { %16 = vsyncpa [#allocation4 + $0x1], 0  ;;  %s1432_s30 = smov 0   ;;  %s1434_s10 = smov 0  }
   0x2   :  { %s1436_s11 = smov 0   ;;  %s1438_s12 = smov 0  }
   0x3   :  { %s1440_s13 = smov 0   ;;  %s1442_s14 = smov 0  }
   0x4 LB: > { %s1006_s15 = sadd.s32 4294967295, %s1376_s14   ;;  %s1007_s16 = sadd.s32 4294967294, %s1376_s14   ;;  %s1376_s14 = sphi %s1442_s14, %s22_s14   ;;  %s1372_s13 = sphi %s1440_s13, %s1675_s13   ;;  %s1368_s12 = sphi %s1438_s12, %s1674_s12   ;;  %s1364_s11 = sphi %s1436_s11, %s1673_s11   ;;  %s1360_s10 = sphi %s1434_s10, %s1672_s10   ;;  %s1356_s30 = sphi %s1432_s30, %s1671_s30  }
   0x5   : > { %s34_s17 = sadd.s32 1, %s1372_s13  ;;  %s249_s18 = sadd.s32 1, %s1364_s11 }
   0x6   : > { %p36_p0 = scmp.ge.s32.totalorder %s34_s17, 2  ;;  %p259_p1 = scmp.ne.s32.totalorder %s1364_s11, %s1360_s10 }
   0x7   : > { %p260_p2 = scmp.eq.s32.totalorder %s1006_s15, 1  ;;  %p265_p3 = scmp.ne.s32.totalorder %s1360_s10, %s1356_s30 }
   0x8   : > { %s1677_s17 = smov (%p36_p0, %s34_s17), 0  ;;  %p266_p5 = scmp.eq.s32.totalorder %s1007_s16, 1 }
   0x9   : > { %p1472_p4 = por %p260_p2, %p259_p1  ;;  %s246_s20 = ssub.s32 %s1372_s13, %s1677_s17 }
   0xa   : > { %p1010_p6 = scmp.ge.s32.totalorder %s1376_s14, 1  ;;  %p247_p7 = scmp.eq.s32.totalorder %s246_s20, 0 }
   0xb   : > { %p1479_p8 = por %p266_p5, %p265_p3  ;;  %p334_p9 = scmp.lt.s32.totalorder %s1376_s14, 3 }
   0xc   : > { %s1485_s22 = scalar_select %p247_p7, %s1364_s11, %s249_s18  }
   0xd   : > { %p335_p10 = pnand %p1010_p6, %p334_p9 }
   0xe   : > { %v1256_v0 = vld [vmem:[%s1662_s3] sm:$0xff] (!%p335_p10)   ;;  %p386_p11 = scmp.lt.s32.totalorder (!%p335_p10), %s1368_s12, 1  ;;  %v1257_v1 = vld [vmem:[%s1662_s3 + $0x8] sm:$0xff] (!%p335_p10)   ;;  %v427_v2 = vlaneseq (!%p335_p10)  ;;  %v1258_v3 = vld [vmem:[%s1662_s3 + $0x10] sm:$0xff] (!%p335_p10)   ;;  %vm654_vm0 = vcmask (!%p335_p10), 261120   ;;  %vm1380_vm1 = vmmov (!%p335_p10), 0  }
   0xf   : > { %338 = sbr.rel (%p335_p10) target bundleno = 780 (0x30c), region = 56  ;;  %1103 = vmatprep.subr.bf16.mxu0 (!%p335_p10), %v1256_v0  ;;  %v1259_v5 = vld [vmem:[%s1662_s3 + $0x18] sm:$0xff] (!%p335_p10)   ;;  %v1260_v10 = vld [vmem:[%s1662_s3 + $0x20] sm:$0xff] (!%p335_p10)   ;;  %v1261_v15 = vld [vmem:[%s1662_s3 + $0x28] sm:$0xff] (!%p335_p10)   ;;  %s1044_s16 = sshll.u32 (!%p335_p10), %s1368_s12, 4 }
  0x10   : > { %1104 = vmatpush3.bf16.msra.mxu0 (!%p335_p10), %v1256_v0  ;;  %v428_v4 = vshrl.u32 (!%p335_p10), %v427_v2, 7  ;;  %v1262_v19 = vld [vmem:[%s1662_s3 + $0x30] sm:$0xff] (!%p335_p10)   ;;  %v1263_v22 = vld [vmem:[%s1662_s3 + $0x38] sm:$0xff] (!%p335_p10)   ;;  %v1264_v36 = vld [vmem:[%s1664_s5] sm:$0xff] (!%p335_p10)   ;;  %s1612_s25 = scalar_lea.hbm (!%p335_p10), %s1668_s9, %s1044_s16 }
  0x11   : > { %1105 = vmatprep.subr.bf16.mxu0 (!%p335_p10), %v1257_v1  ;;  %1127 = vmatprep.subr.bf16.mxu1 (!%p335_p10), %v1264_v36  ;;  %v1265_v37 = vld [vmem:[%s1664_s5 + $0x8] sm:$0xff] (!%p335_p10)   ;;  %v1016_v40 = vld [vmem:[%s1663_s4] ss:$0 sm:$0xff] (!%p335_p10) }
  0x12   : > { %v429_v8 = vsub.s32 (!%p335_p10), 0, %v428_v4  ;;  %1128 = vmatpush3.bf16.msra.mxu1 (!%p335_p10), %v1264_v36  ;;  %v822_v36 = vld [vmem:[%s1666_s7 + $0x68] sm:$0xff] (!%p335_p10) }
  0x13   : > { %1129 = vmatprep.subr.bf16.mxu1 (!%p335_p10), %v1265_v37 }
  0x14   : > { %1106 = vmatpush3.bf16.msra.mxu0 (!%p335_p10), %v1257_v1 }
  0x15   : > { %1107 = vmatprep.subr.bf16.mxu0 (!%p335_p10), %v1258_v3 }
  0x16   : > { %s1495_s27 = scalar_select %p386_p11, %s1368_s12, 1  ;;  %1130 = vmatpush3.bf16.msra.mxu1 %v1265_v37 }
  0x17   : > { %s1381_s12 = smov [#allocation3]  }
  0x18   : > { %s397_s18 = scalar_lea.vmem %s1660_s1, %s1495_s27  ;;  %s1047_s24 = sshll.u32 %s1495_s27, 5  ;;  %1108 = vmatpush3.bf16.msra.mxu0 %v1258_v3 }
  0x19   : > { %v414_v6 = vld [vmem:[%s397_s18] sm:$0x1]  ;;  %s1513_s28 = scalar_lea.vmem %s1659_s0, %s1047_s24  ;;  %1109 = vmatprep.subr.bf16.mxu0 %v1259_v5  ;;  %s406_s23 = scalar_lea.vmem %s1661_s2, %s1047_s24 }
  0x1a   : > { %v415_v7 = vpack.c.bf16 %v414_v6, %v414_v6  ;;  %v416_v12 = vld [vmem:[%s1513_s28] sm:$0xf]  ;;  %v417_v13 = vld [vmem:[%s1513_s28 + $0x4] sm:$0xf]  ;;  %v418_v20 = vld [vmem:[%s1513_s28 + $0x8] sm:$0xf] }
  0x1b   : > { %v419_v21 = vld [vmem:[%s1513_s28 + $0xc] sm:$0xf]  ;;  %v420_v23 = vld [vmem:[%s1513_s28 + $0x10] sm:$0xf]  ;;  %v421_v24 = vld [vmem:[%s1513_s28 + $0x14] sm:$0xf] }
  0x1c   : > { %v425_v9 = vpack.i.b16 %v415_v7, %v415_v7  ;;  %1110 = vmatpush3.bf16.msra.mxu0 %v1259_v5  ;;  %v422_v31 = vld [vmem:[%s1513_s28 + $0x18] sm:$0xf]  ;;  %v423_v32 = vld [vmem:[%s1513_s28 + $0x1c] sm:$0xf]  ;;  %v1065_v38 = vld [vmem:[%s406_s23 + $0x8] sm:$0xff]   ;;  %s383_s24 = sand.u32 1, %s1360_s10  }
  0x1d   : > { %1111 = vmatprep.subr.bf16.mxu0 %v1260_v10  ;;  %v1050_v39 = vld [vmem:[%s406_s23] sm:$0xff]   ;;  %v1055_v41 = vunpack.c.l.bf16 %v1065_v38  ;;  %v1056_v46 = vunpack.c.h.bf16 %v1065_v38  ;;  %v1067_v55 = vld [vmem:[%s406_s23 + $0x18] sm:$0xff]   ;;  %v1066_v57 = vld [vmem:[%s406_s23 + $0x10] sm:$0xff]   ;;  %s384_s18 = scalar_lea.vmem [#allocation3], %s383_s24  ;;  %s898_s26 = scalar_lea.sflag [#allocation4], %s383_s24 }
  0x1e   : > { %v430_v11 = vrot.slane %v425_v9, %v429_v8  ;;  %v1051_v43 = vunpack.c.l.bf16 %v1050_v39  ;;  %v1052_v49 = vunpack.c.h.bf16 %v1050_v39  ;;  %v1063_v60 = vunpack.c.l.bf16 %v1067_v55  ;;  %v823_v38 = vld [vmem:[%s1666_s7 + $0x70] sm:$0xff]  ;;  %v824_v39 = vld [vmem:[%s1666_s7 + $0x78] sm:$0xff]  ;;  %s910_s28 = sshll.u32 %s384_s18, 4  ;;  %s1302_s29 = sshll.u32 %s1381_s12, 4  ;;  %s1614_s28 = int_to_ptr.vmem [resolvable:$true] %s910_s28  ;;  %s1303_s29 = int_to_ptr.vmem [resolvable:$false] %s1302_s29 }
  0x1f   : > { %v1059_v62 = vunpack.c.l.bf16 %v1066_v57  ;;  %v1064_v2 = vunpack.c.h.bf16 %v1067_v55  ;;  %v1060_v5 = vunpack.c.h.bf16 %v1066_v57  ;;  %s1298_s27 = scalar_lea.vmem %s1614_s28, 16  ;;  %s1304_s15 = scalar_lea.vmem %s1303_s29, 32 }
  0x20   : > { %v1015_v14 = vcombine.low %v430_v11, %v430_v11  ;;  %1112 = vmatpush3.bf16.msra.mxu0 %v1260_v10  ;;  %p1299_p12 = scmp.ne.s32.totalorder %s1614_s28, %s1298_s27  ;;  %p1305_p1 = scmp.lt.s32.totalorder %s1614_s28, %s1303_s29 }
  0x21   : > { %1113 = vmatprep.subr.bf16.mxu0 %v1261_v15  ;;  %p1306_p2 = scmp.lt.s32.totalorder %s1304_s15, %s1298_s27 }
  0x22   : > { %v435_v16 = vmul.bf16 %v1015_v14, %v416_v12  ;;  %v436_v17 = vmul.bf16 %v1015_v14, %v417_v13  ;;  %v437_v25 = vmul.bf16 %v1015_v14, %v418_v20  ;;  %v438_v26 = vmul.bf16 %v1015_v14, %v419_v21  ;;  %v812_v20 = vld [vmem:[%s1666_s7 + $0x18] sm:$0xff]  ;;  %p1300_p13 = pnand %p1299_p12, %p1472_p4 }
  0x23   : > { %v439_v27 = vmul.bf16 %v1015_v14, %v420_v23  ;;  %v440_v28 = vmul.bf16 %v1015_v14, %v421_v24  ;;  %v441_v33 = vmul.bf16 %v1015_v14, %v422_v31  ;;  %v442_v34 = vmul.bf16 %v1015_v14, %v423_v32  ;;  %v814_v23 = vld [vmem:[%s1666_s7 + $0x28] sm:$0xff]  ;;  %v819_v31 = vld [vmem:[%s1666_s7 + $0x50] sm:$0xff]  ;;  %p1307_p3 = por %p1306_p2, %p1305_p1 }
  0x24   : > { %v1017_v18 = vcombine.low %v435_v16, %v436_v17  ;;  %1114 = vmatpush3.bf16.msra.mxu0 %v1261_v15  ;;  %v1018_v29 = vcombine.low %v437_v25, %v438_v26  ;;  %v809_v15 = vld [vmem:[%s1666_s7] sm:$0xff]  ;;  %v810_v16 = vld [vmem:[%s1666_s7 + $0x8] sm:$0xff]  ;;  %v815_v25 = vld [vmem:[%s1666_s7 + $0x30] sm:$0xff]  ;;  %p1301_p0 = pneg %p1300_p13 }
  0x25   : > { %1115 = vmatprep.subr.bf16.mxu0 %v1262_v19  ;;  %v1019_v30 = vcombine.low %v439_v27, %v440_v28  ;;  %v1020_v35 = vcombine.low %v441_v33, %v442_v34  ;;  %v1175_v17 = vpack.c.bf16 %v810_v16, %v809_v15  ;;  %v816_v26 = vld [vmem:[%s1666_s7 + $0x38] sm:$0xff]  ;;  %v1379_v28 = vmov 0.0  }
  0x26   : > { %1119 = vmatprep.mubr.bf16.mxu0 %v1017_v18  ;;  %v1378_v18 = vmov 0.0|0.0   ;;  %v1184_v27 = vpack.c.bf16 %v816_v26, %v815_v25  ;;  %413 = vst [vmem:[#allocation2] sm:$0x1] %v1379_v28  ;;  %v820_v33 = vld [vmem:[%s1666_s7 + $0x58] sm:$0xff]  ;;  %p1308_p5 = pnand %p1307_p3, %p1301_p0 }
  0x27   : > { %1174 = vmatprep.subr.bf16.mxu1 %v1378_v18  ;;  %v1190_v34 = vpack.c.bf16 %v820_v33, %v819_v31 }
  0x28   : > { %1116 = vmatpush3.bf16.msra.mxu0 %v1262_v19  ;;  %v811_v19 = vld [vmem:[%s1666_s7 + $0x10] sm:$0xff] }
  0x29   : > { %1117 = vmatprep.subr.bf16.mxu0 %v1263_v22  ;;  %v1178_v21 = vpack.c.bf16 %v812_v20, %v811_v19 }
  0x2c   : > { %1118 = vmatpush3.bf16.msra.mxu0 %v1263_v22  ;;  %v813_v22 = vld [vmem:[%s1666_s7 + $0x20] sm:$0xff] }
  0x2d   : > { %v1181_v24 = vpack.c.bf16 %v814_v23, %v813_v22 }
  0x2f   : > { %1120 = vmatmul.mubr.bf16.vlgmr.msra.gmra.mrb[0].mxu0 %v1018_v29  ;;  %v817_v29 = vld [vmem:[%s1666_s7 + $0x40] sm:$0xff] }
  0x30   : > { %1123 = vmatprep.mubr.bf16.mxu0 %v1019_v30  ;;  %v818_v30 = vld [vmem:[%s1666_s7 + $0x48] sm:$0xff] }
  0x31   : > { %v1187_v32 = vpack.c.bf16 %v818_v30, %v817_v29 }
  0x37   : > { %1124 = vmatmul.mubr.bf16.gmra.mrb[4].mxu0 %v1020_v35  ;;  %v821_v35 = vld [vmem:[%s1666_s7 + $0x60] sm:$0xff] }
  0x38   : > { %v1193_v37 = vpack.c.bf16 %v822_v36, %v821_v35 }
 0x102   : > { %v1121_v42 = vpop.f32.mrb[0].mxu0 }
 0x103   : > { %v581_v44 = vadd.f32 %v1121_v42, %v1016_v40  ;;  %v572_v45 = vpop.f32.mrb[1].mxu0 }
 0x104   : > { %v573_v47 = vadd.f32 %v1016_v40, %v572_v45  ;;  %v1122_v48 = vpop.f32.mrb[2].mxu0 }
 0x105   : > { %v621_v50 = vadd.f32 %v1055_v41, %v581_v44  ;;  %v584_v51 = vadd.f32 %v1122_v48, %v1016_v40  ;;  %v575_v52 = vpop.f32.mrb[3].mxu0  ;;  %v1029_v41 = vld [vmem:[%s1665_s6] ss:$0 sm:$0xff] }
 0x106   : > { %v619_v53 = vadd.f32 %v1051_v43, %v573_v47  ;;  %v576_v54 = vadd.f32 %v1016_v40, %v575_v52 }
 0x107   : > { %v622_v56 = vadd.f32 %v1056_v46, %v584_v51 }
 0x108   : > { %v620_v58 = vadd.f32 %v1052_v49, %v576_v54 }
 0x109   : > { %v628_v59 = vpack.c.bf16 %v622_v56, %v621_v50 }
 0x10a   : > { %v1125_v61 = vpop.f32.mrb[4].mxu0  ;;  %v627_v63 = vpack.c.bf16 %v620_v58, %v619_v53 }
 0x10b   : > { %v597_v0 = vadd.f32 %v1125_v61, %v1016_v40  ;;  %v588_v1 = vpop.f32.mrb[5].mxu0 }
 0x10c   : > { %v589_v3 = vadd.f32 %v1016_v40, %v588_v1  ;;  %v1126_v4 = vpop.f32.mrb[6].mxu0  ;;  %1131 = vmatprep.mubr.msk.bf16.mxu1 %vm654_vm0, %v627_v63 }
 0x10d   : > { %v625_v6 = vadd.f32 %v1063_v60, %v597_v0  ;;  %v600_v7 = vadd.f32 %v1126_v4, %v1016_v40  ;;  %v591_v8 = vpop.f32.mrb[7].mxu0  ;;  %1132 = vmatmul.mubr.msk.bf16.vlgmr.msra.gmra.mrb[0].mxu1 %vm654_vm0, %v628_v59 }
 0x10e   : > { %v623_v9 = vadd.f32 %v1059_v62, %v589_v3  ;;  %v592_v10 = vadd.f32 %v1016_v40, %v591_v8  ;;  %1176 = vmatpush3.bf16.msra.mxu1 %v1175_v17  ;;  %v1196_v40 = vpack.c.bf16 %v824_v39, %v823_v38 }
 0x10f   : > { %v626_v11 = vadd.f32 %v1064_v2, %v600_v7  ;;  %1177 = vmatprep.subr.bf16.mxu1 %v1378_v18 }
 0x110   : > { %v624_v12 = vadd.f32 %v1060_v5, %v592_v10 }
 0x111   : > { %v630_v13 = vpack.c.bf16 %v626_v11, %v625_v6 }
 0x112   : > { %v629_v14 = vpack.c.bf16 %v624_v12, %v623_v9  ;;  %1179 = vmatpush3.bf16.msra.mxu1 %v1178_v21 }
 0x113   : > { %1180 = vmatprep.subr.bf16.mxu1 %v1378_v18 }
 0x114   : > { %1135 = vmatprep.mubr.msk.bf16.mxu1 %vm654_vm0, %v629_v14 }
 0x115   : > { %1136 = vmatmul.mubr.msk.bf16.gmra.mrb[4].mxu1 %vm654_vm0, %v630_v13 }
 0x116   : > { %1182 = vmatpush3.bf16.msra.mxu1 %v1181_v24  ;;  %1171 = vmatprep.mubr.msk.f32.mxu1 %vm1380_vm1, %v1379_v28 }
 0x117   : > { %1183 = vmatprep.subr.bf16.mxu1 %v1378_v18 }
 0x11a   : > { %1185 = vmatpush3.bf16.msra.mxu1 %v1184_v27 }
 0x11b   : > { %1186 = vmatprep.subr.bf16.mxu1 %v1378_v18 }
 0x11e   : > { %1188 = vmatpush3.bf16.msra.mxu1 %v1187_v32 }
 0x11f   : > { %1189 = vmatprep.subr.bf16.mxu1 %v1378_v18 }
 0x122   : > { %1191 = vmatpush3.bf16.msra.mxu1 %v1190_v34 }
 0x123   : > { %1192 = vmatprep.subr.bf16.mxu1 %v1378_v18 }
 0x126   : > { %1194 = vmatpush3.bf16.msra.mxu1 %v1193_v37 }
 0x127   : > { %1195 = vmatprep.subr.bf16.mxu1 %v1378_v18 }
 0x12a   : > { %1197 = vmatpush3.bf16.msra.mxu1 %v1196_v40 }
 0x1e0   : > { %v1133_v42 = vpop.f32.mrb[0].mxu1 }
 0x1e1   : > { %v710_v43 = vadd.f32 %v1133_v42, %v1029_v41  ;;  %v701_v44 = vpop.f32.mrb[1].mxu1 }
 0x1e2   : > { %v702_v45 = vadd.f32 %v1029_v41, %v701_v44  ;;  %v1134_v46 = vpop.f32.mrb[2].mxu1 }
 0x1e3   : > { %v1038_v47 = vmul.f32 -1.442695, %v710_v43  ;;  %v713_v48 = vadd.f32 %v1134_v46, %v1029_v41  ;;  %v704_v49 = vpop.f32.mrb[3].mxu1  ;;  %v788_v46 = vld [vmem:[#allocation2] sm:$0x1] }
 0x1e4   : > { %v1036_v50 = vmul.f32 -1.442695, %v702_v45  ;;  %v705_v51 = vadd.f32 %v1029_v41, %v704_v49 }
 0x1e5   : > { %1266 = vpow2.f32 %v1038_v47  ;;  %v1039_v52 = vmul.f32 -1.442695, %v713_v48 }
 0x1e6   : > { %1268 = vpow2.f32 %v1036_v50  ;;  %v1037_v53 = vmul.f32 -1.442695, %v705_v51 }
 0x1e7   : > { %1270 = vpow2.f32 %v1039_v52 }
 0x1e8   : > { %1272 = vpow2.f32 %v1037_v53  ;;  %v1137_v54 = vpop.f32.mrb[4].mxu1 }
 0x1e9   : > { %v726_v55 = vadd.f32 %v1137_v54, %v1029_v41  ;;  %v717_v56 = vpop.f32.mrb[5].mxu1 }
 0x1ea   : > { %v718_v57 = vadd.f32 %v1029_v41, %v717_v56  ;;  %v1138_v58 = vpop.f32.mrb[6].mxu1 }
 0x1eb   : > { %v1042_v59 = vmul.f32 -1.442695, %v726_v55  ;;  %v729_v60 = vadd.f32 %v1138_v58, %v1029_v41  ;;  %v720_v61 = vpop.f32.mrb[7].mxu1 }
 0x1ec   : > { %v1040_v62 = vmul.f32 -1.442695, %v718_v57  ;;  %v721_v63 = vadd.f32 %v1029_v41, %v720_v61 }
 0x1ed   : > { %1274 = vpow2.f32 %v1042_v59  ;;  %v1043_v0 = vmul.f32 -1.442695, %v729_v60 }
 0x1ee   : > { %1276 = vpow2.f32 %v1040_v62  ;;  %v1041_v1 = vmul.f32 -1.442695, %v721_v63 }
 0x1ef   : > { %v1267_v2 = vpop.eup %1266  ;;  %1278 = vpow2.f32 %v1043_v0 }
 0x1f0   : > { %v1269_v3 = vpop.eup %1268  ;;  %v758_v4 = vadd.f32 1.0, %v1267_v2  ;;  %1280 = vpow2.f32 %v1041_v1 }
 0x1f1   : > { %v1271_v5 = vpop.eup %1270  ;;  %v756_v6 = vadd.f32 1.0, %v1269_v3 }
 0x1f2   : > { %v1273_v7 = vpop.eup %1272  ;;  %v759_v8 = vadd.f32 1.0, %v1271_v5 }
 0x1f3   : > { %1282 = vrcp.f32 %v756_v6  ;;  %v757_v9 = vadd.f32 1.0, %v1273_v7 }
 0x1f4   : > { %1284 = vrcp.f32 %v758_v4 }
 0x1f5   : > { %1286 = vrcp.f32 %v757_v9 }
 0x1f6   : > { %1288 = vrcp.f32 %v759_v8 }
 0x1f7   : > { %v1275_v10 = vpop.eup %1274 }
 0x1f8   : > { %v1277_v11 = vpop.eup %1276  ;;  %v762_v12 = vadd.f32 1.0, %v1275_v10 }
 0x1f9   : > { %v1279_v13 = vpop.eup %1278  ;;  %v760_v14 = vadd.f32 1.0, %v1277_v11 }
 0x1fa   : > { %v1281_v15 = vpop.eup %1280  ;;  %v763_v16 = vadd.f32 1.0, %v1279_v13 }
 0x1fb   : > { %1290 = vrcp.f32 %v760_v14  ;;  %v761_v17 = vadd.f32 1.0, %v1281_v15 }
 0x1fc   : > { %1292 = vrcp.f32 %v762_v12 }
 0x1fd   : > { %v1283_v18 = vpop.eup %1282  ;;  %1294 = vrcp.f32 %v761_v17 }
 0x1fe   : > { %v1285_v19 = vpop.eup %1284  ;;  %1296 = vrcp.f32 %v763_v16  ;;  %v780_v21 = vmul.f32 %v1283_v18, %v702_v45 }
 0x1ff   : > { %v1287_v20 = vpop.eup %1286  ;;  %v782_v24 = vmul.f32 %v1285_v19, %v710_v43 }
 0x200   : > { %v781_v22 = vmul.f32 %v1287_v20, %v705_v51  ;;  %v1289_v23 = vpop.eup %1288  ;;  %v825_v51 = vld [vmem:[%s1667_s8] sm:$0x1] }
 0x201   : > { %v783_v26 = vmul.f32 %v1289_v23, %v713_v48 }
 0x202   : > { %v789_v25 = vadd.f32 %v781_v22, %v780_v21 }
 0x204   : > { %v790_v27 = vadd.f32 %v789_v25, %v782_v24 }
 0x205   : > { %v1291_v28 = vpop.eup %1290 }
 0x206   : > { %v1293_v29 = vpop.eup %1292  ;;  %v784_v30 = vmul.f32 %v1291_v28, %v718_v57  ;;  %v791_v31 = vadd.f32 %v790_v27, %v783_v26 }
 0x207   : > { %v1295_v32 = vpop.eup %1294  ;;  %v786_v36 = vmul.f32 %v1293_v29, %v726_v55 }
 0x208   : > { %v792_v33 = vadd.f32 %v791_v31, %v784_v30  ;;  %v785_v34 = vmul.f32 %v1295_v32, %v721_v63  ;;  %v1297_v35 = vpop.eup %1296 }
 0x209   : > { %v787_v38 = vmul.f32 %v1297_v35, %v729_v60 }
 0x20a   : > { %v793_v37 = vadd.f32 %v792_v33, %v785_v34 }
 0x20c   : > { %v794_v39 = vadd.f32 %v793_v37, %v786_v36 }
 0x20e   : > { %v795_v40 = vadd.f32 %v794_v39, %v787_v38 }
 0x210   : > { %v796_v41 = vrot.slane %v795_v40, 4 }
 0x212   : > { %v797_v42 = vadd.f32 %v796_v41, %v795_v40 }
 0x214   : > { %v798_v43 = vrot.slane %v797_v42, 2 }
 0x216   : > { %v799_v44 = vadd.f32 %v798_v43, %v797_v42 }
 0x218   : > { %v800_v45 = vrot.slane %v799_v44, 1 }
 0x21a   : > { %v801_v47 = vadd.f32 %v800_v45, %v799_v44 }
 0x21c   : > { %v802_v48 = vadd.f32 %v801_v47, %v788_v46 }
 0x21e   : > { %803 = vst [vmem:[#allocation2] sm:$0x1] %v802_v48 }
 0x225   : > { %v807_v49 = vld [vmem:[#allocation2] sm:$0x1] }
 0x226   : > { %v808_v50 = vmul.f32 0.015625, %v807_v49 }
 0x228   : > { %1172 = vmatmul.mubr.f32.vlgmr.msra.gmra.mrb[8].mxu1 %v808_v50 }
 0x2fb   : > { %v892_v52 = vpop.f32.mrb[8].mxu1 }
 0x2fc   : > { %v893_v53 = vadd.f32 %v892_v52, %v825_v51  ;;  %v1173_v54 = vpop.f32.mrb[9].mxu1 }
 0x2fe   : > { %896 = vst [vmem:[%s384_s18] sm:$0x1] %v893_v53 }
 0x2ff   : > { %1311 = shalt.err (!%p1308_p5)
}
 0x300   : > { %s1312_s24 = scalar_lea.hbm %s1612_s25, 16  ;;  %s1316_s20 = scalar_lea.hbm %s1668_s9, 32 }
 0x301   : > { %p1313_p6 = scmp.ne.s32.totalorder %s1612_s25, %s1312_s24  ;;  %p1317_p10 = scmp.lt.u32.totalorder %s1612_s25, %s1668_s9 }
 0x302   : > { %p1318_p11 = scmp.lt.u32.totalorder %s1316_s20, %s1312_s24  ;;  %p1320_p13 = scmp.lt.u32.totalorder %s1312_s24, %s1612_s25 }
 0x303   : > { %p1314_p7 = pnand %p1313_p6, %p1472_p4 }
 0x304   : > { %p1319_p12 = por %p1318_p11, %p1317_p10 }
 0x305   : > { %p1315_p9 = pneg %p1314_p7 }
 0x306   : > { %p1321_p0 = por %p1320_p13, %p1319_p12 }
 0x308   : > { %p1322_p1 = pnand %p1321_p0, %p1315_p9 }
 0x30a   : > { %1325 = shalt.err (!%p1322_p1)
}
 0x30b   : > { %1198 = dma.vmem_to_hbm [thread:$0]  (%p1472_p4), %s1614_s28, 16, %s1612_s25, %s898_s26  }
 0x30c PF: > { %p1204_p2 = scmp.ge.s32.totalorder %s1376_s14, 2  ;;  %s922_s27 = sand.u32 1, %s1356_s30  }
 0x30d   : > { %s923_s29 = scalar_lea.sflag [#allocation4], %s922_s27 }
 0x30e   : > { %p1201_p3 = pnand %p1204_p2, %p1479_p8 }
 0x310   : > { %1351 = dma.done.wait (!%p1201_p3), %s923_s29, 16  }
 0x311   : > { %1353 = vsyncadd (!%p1201_p3), %s923_s29, 4294967280  ;;  %s22_s14 = sadd.s32 1, %s1376_s14   ;;  %s1671_s30 = smov %s1360_s10 }
 0x312   : > { %p19_p5 = scmp.ge.s32.totalorder %s22_s14, 4   ;;  %s1672_s10 = smov %s1364_s11 }
 0x313   : > { %s1673_s11 = smov %s1485_s22  ;;  %s1674_s12 = smov %s1372_s13 }
 0x314   : > { %s1675_s13 = smov %s1677_s17  ;;  %21 = sbr.rel (!%p19_p5) target bundleno = 4 (0x4), region = 105 }
 0x31b   :  { %927 = vsyncpa [#allocation4], 1 }
 0x31c   :  { %929 = vsyncpa [#allocation4 + $0x1], 1 }

</bundles_post_ra>
